<compile_context>
chip_gen: v7x
topology: tpu7x:2x2x1
jax: 0.10.0
libtpu: 0.0.40
codegen_flags: <defaults>
</compile_context>

<pallas_src>
import functools

import jax
import jax.numpy as jnp
from jax import lax
from jax.experimental import pallas as pl
from jax.experimental.pallas import tpu as pltpu


def _round_up(x, m):
    return ((x + m - 1) // m) * m


def _pick_block(n, candidates):
    for c in candidates:
        if c <= n and n % c == 0:
            return c
    return n  # n is a multiple of 128 by construction


def _normalize_kernel(x_ref, out_ref):
    """Row-wise L2 normalization (== F.normalize(p=2, eps=1e-12)), cast to bf16."""
    x = x_ref[...].astype(jnp.float32)
    ss = jnp.sum(x * x, axis=-1, keepdims=True)
    inv = lax.rsqrt(jnp.maximum(ss, jnp.float32(1e-24)))   # == 1 / max(||x||, 1e-12)
    out_ref[...] = (x * inv).astype(out_ref.dtype)


def _supcon_tile_kernel(xr_ref, xc_ref, labr_ref, labc_ref, out_ref,
                        m_sc, l_sc, pos_sc, npos_sc, *, tau, n_valid, bm, bn):
    i = pl.program_id(0)   # row block  (parallel)
    j = pl.program_id(1)   # col block  (reduction, last grid axis)

    @pl.when(j == 0)
    def _():
        m_sc[...] = jnp.full(m_sc.shape, -1e30, jnp.float32)
        l_sc[...] = jnp.zeros(l_sc.shape, jnp.float32)
        pos_sc[...] = jnp.zeros(pos_sc.shape, jnp.float32)
        npos_sc[...] = jnp.zeros(npos_sc.shape, jnp.float32)

    # (bm, bn) tile of the scaled cosine-similarity matrix: bf16 operands on the
    # MXU, f32 accumulation.
    s = lax.dot_general(
        xr_ref[...], xc_ref[...],
        dimension_numbers=(((1,), (1,)), ((), ())),
        preferred_element_type=jnp.float32,
    ) * jnp.float32(1.0 / tau)

    # Per-tile diagonal / padded-column masks (no NxN iota temporaries).
    row_g = i * bm + lax.broadcasted_iota(jnp.int32, (bm, bn), 0)
    col_g = j * bn + lax.broadcasted_iota(jnp.int32, (bm, bn), 1)
    is_diag = row_g == col_g
    col_ok = col_g < n_valid
    s = jnp.where(is_diag | (~col_ok), -jnp.inf, s)

    # Online log-sum-exp over column blocks.
    m_prev = m_sc[...]
    m_new = jnp.maximum(m_prev, jnp.max(s, axis=-1, keepdims=True))
    alpha = jnp.exp(m_prev - m_new)
    p = jnp.exp(s - m_new)                       # exp(-inf) = 0 on masked entries
    l_sc[...] = alpha * l_sc[...] + jnp.sum(p, axis=-1, keepdims=True)
    m_sc[...] = m_new

    # Positives: same label, not self, real (non-padded) column.
    pos_mask = (labr_ref[...] == labc_ref[...]) & (~is_diag) & col_ok
    npos_sc[...] += jnp.sum(pos_mask.astype(jnp.float32), axis=-1, keepdims=True)
    # Select, NOT multiply: masked entries of s are -inf and -inf * 0 == NaN.
    pos_sc[...] += jnp.sum(jnp.where(pos_mask, s, 0.0), axis=-1, keepdims=True)

    @pl.when(j == pl.num_programs(1) - 1)
    def _():
        lse = m_sc[...] + jnp.log(l_sc[...])
        npos = npos_sc[...]
        # sum_c mask * (s - lse)  ==  pos_sum - num_pos * lse.
        # Guard npos == 0 (PyTorch gives 0/(0+1e-5) == 0; also avoids 0 * inf).
        contrib = jnp.where(npos > 0.0, pos_sc[...] - npos * lse, 0.0)
        out_ref[...] = contrib / (npos + jnp.float32(1e-5))


def supcon_loss(features, labels, *, tau=1.0, sim="cosine",
                block_rows=256, block_cols=512):
    """Pallas TPU implementation of SupConLoss.forward (default sim='cosine')."""
    if sim != "cosine":
        # TODO(synk): sim='mse' (torch.cdist) and the sqrt-softmax similarity
        # branches are not implemented; only the default 'cosine' path is.
        raise NotImplementedError("only sim='cosine' is implemented")

    B, D = features.shape
    Dp = _round_up(D, 128)                      # lane-align the contraction dim
    Np = _round_up(B, 128)                      # pad rows to a multiple of 128
    bm = _pick_block(Np, (block_rows, 256, 128))
    bn = _pick_block(Np, (block_cols, 512, 256, 128))

    x_pad = jnp.pad(features.astype(jnp.float32), ((0, Np - B), (0, Dp - D)))
    lab = jnp.pad(labels.astype(jnp.int32), (0, Np - B), constant_values=-1)
    lab_col = lab.reshape(Np, 1)
    lab_row = lab.reshape(1, Np)

    # 1) Normalize once (O(N*D)), emit bf16 operands for the MXU.
    xn = pl.pallas_call(
        _normalize_kernel,
        out_shape=jax.ShapeDtypeStruct((Np, Dp), jnp.bfloat16),
        grid_spec=pltpu.PrefetchScalarGridSpec(
            num_scalar_prefetch=0,
            grid=(Np // bm,),
            in_specs=[pl.BlockSpec((bm, Dp), lambda i: (i, 0))],
            out_specs=pl.BlockSpec((bm, Dp), lambda i: (i, 0)),
        ),
        compiler_params=pltpu.CompilerParams(
            dimension_semantics=("parallel",)),
    )(x_pad)

    # 2) Tiled SupCon: per-row pos_avg via online softmax over column blocks.
    pos_avg = pl.pallas_call(
        functools.partial(_supcon_tile_kernel, tau=float(tau),
                          n_valid=B, bm=bm, bn=bn),
        out_shape=jax.ShapeDtypeStruct((Np, 1), jnp.float32),
        grid_spec=pltpu.PrefetchScalarGridSpec(
            num_scalar_prefetch=0,
            grid=(Np // bm, Np // bn),
            in_specs=[
                pl.BlockSpec((bm, Dp), lambda i, j: (i, 0)),   # row features
                pl.BlockSpec((bn, Dp), lambda i, j: (j, 0)),   # col features
                pl.BlockSpec((bm, 1), lambda i, j: (i, 0)),    # row labels
                pl.BlockSpec((1, bn), lambda i, j: (0, j)),    # col labels
            ],
            out_specs=pl.BlockSpec((bm, 1), lambda i, j: (i, 0)),
            scratch_shapes=[pltpu.VMEM((bm, 1), jnp.float32)] * 4,
        ),
        compiler_params=pltpu.CompilerParams(
            dimension_semantics=("parallel", "arbitrary"),
            vmem_limit_bytes=32 * 1024 * 1024,
        ),
    )(xn, xn, lab_col, lab_row)

    # Final scalar reduction over <= N values (trivial, done in plain JAX).
    return -jnp.sum(pos_avg[:B, 0]) / jnp.float32(B)


def _reference(features, labels, tau=1.0):
    """Pure-JAX transcription of the PyTorch forward, for a sanity check."""
    B = features.shape[0]
    xn = features / jnp.maximum(
        jnp.linalg.norm(features, axis=-1, keepdims=True), 1e-12)
    sim = xn @ xn.T
    eye = jnp.eye(B, dtype=bool)
    sim = jnp.where(eye, -jnp.inf, sim)
    logsm = jax.nn.log_softmax(sim / tau, axis=-1)
    logsm = jnp.where(eye, 0.0, logsm)
    mask = (labels[:, None] == labels[None, :]).astype(jnp.float32)
    mask = jnp.where(eye, 0.0, mask)
    pos_avg = jnp.sum(logsm * mask, axis=-1) / (jnp.sum(mask, axis=-1) + 1e-5)
    return -jnp.sum(pos_avg) / B


if __name__ == "__main__":
    key = jax.random.PRNGKey(0)
    k1, k2 = jax.random.split(key)

    # Pads to N=384, D=128 -> 3x3 grid of 128x128 tiles (exercises diagonal
    # blocks, off-diagonal blocks, column padding, and multi-block reduction).
    B, D, C = 300, 72, 7
    features = jax.random.normal(k1, (B, D), dtype=jnp.float32)
    labels = jax.random.randint(k2, (B,), 0, C, dtype=jnp.int32)

    loss = jax.jit(supcon_loss)(features, labels)
    jax.block_until_ready(loss)

    ref = _reference(features, labels)
    assert jnp.isfinite(loss), loss
    # bf16 MXU operands shift similarities at the ~1e-3 level; loosen tolerance.
    assert jnp.allclose(loss, ref, atol=1e-2, rtol=1e-2), (loss, ref)

    print("KERNEL_OK")
</pallas_src>

<mosaic_0001>
module attributes {stable_mosaic.version = 11 : i64} {
  func.func @_normalize_kernel(%arg0: i32, %arg1: memref<128x128xf32, #tpu.memory_space<vmem>>, %arg2: memref<128x128xbf16, #tpu.memory_space<vmem>>) attributes {dimension_semantics = [#tpu.dimension_semantics<parallel>], iteration_bounds = array<i64: 3>, scalar_prefetch = 0 : i64, scratch_operands = 0 : i64, tpu.core_type = #tpu.core_type<tc>, window_params = [{transform_indices = @transform_0, window_bounds = array<i64: 128, 128>}, {transform_indices = @transform_1, window_bounds = array<i64: 128, 128>}]} {
    %c0 = arith.constant 0 : index
    %c0_0 = arith.constant 0 : index
    %0 = vector.load %arg1[%c0, %c0_0] : memref<128x128xf32, #tpu.memory_space<vmem>>, vector<128x128xf32>
    %1 = arith.mulf %0, %0 : vector<128x128xf32>
    %cst = arith.constant dense<0.000000e+00> : vector<128xf32>
    %2 = vector.multi_reduction <add>, %1, %cst [1] : vector<128x128xf32> to vector<128xf32>
    %3 = vector.shape_cast %2 : vector<128xf32> to vector<128x1xf32>
    %cst_1 = arith.constant 1.000000e-24 : f32
    %4 = vector.broadcast %cst_1 : f32 to vector<128x1xf32>
    %5 = arith.maximumf %3, %4 : vector<128x1xf32>
    %6 = math.rsqrt %5 : vector<128x1xf32>
    %7 = vector.broadcast %6 : vector<128x1xf32> to vector<128x128xf32>
    %8 = arith.mulf %0, %7 : vector<128x128xf32>
    %9 = arith.truncf %8 : vector<128x128xf32> to vector<128x128xbf16>
    %c0_2 = arith.constant 0 : index
    %c0_3 = arith.constant 0 : index
    %10 = vector.load %arg2[%c0_2, %c0_3] : memref<128x128xbf16, #tpu.memory_space<vmem>>, vector<128x128xbf16>
    tpu.vector_store %arg2[%c0_2, %c0_3], %9 {strides = array<i32>} : memref<128x128xbf16, #tpu.memory_space<vmem>>, vector<128x128xbf16>,
    return
  }
  func.func @transform_0(%arg0: i32) -> (i32, i32) {
    %c0_i32 = arith.constant 0 : i32
    %c0_i32_0 = arith.constant 0 : i32
    return %arg0, %c0_i32 : i32, i32
  }
  func.func @transform_1(%arg0: i32) -> (i32, i32) {
    %c0_i32 = arith.constant 0 : i32
    %c0_i32_0 = arith.constant 0 : i32
    return %arg0, %c0_i32 : i32, i32
  }
}

module attributes {stable_mosaic.version = 11 : i64} {
  func.func @_supcon_tile_kernel(%arg0: i32, %arg1: i32, %arg2: memref<128x128xbf16, #tpu.memory_space<vmem>>, %arg3: memref<128x128xbf16, #tpu.memory_space<vmem>>, %arg4: memref<128x1xi32, #tpu.memory_space<vmem>>, %arg5: memref<1x128xi32, #tpu.memory_space<vmem>>, %arg6: memref<128x1xf32, #tpu.memory_space<vmem>>, %arg7: memref<128x1xf32, #tpu.memory_space<vmem>>, %arg8: memref<128x1xf32, #tpu.memory_space<vmem>>, %arg9: memref<128x1xf32, #tpu.memory_space<vmem>>, %arg10: memref<128x1xf32, #tpu.memory_space<vmem>>) attributes {dimension_semantics = [#tpu.dimension_semantics<parallel>, #tpu.dimension_semantics<arbitrary>], iteration_bounds = array<i64: 3, 3>, scalar_prefetch = 0 : i64, scratch_operands = 4 : i64, tpu.core_type = #tpu.core_type<tc>, window_params = [{transform_indices = @transform_0, window_bounds = array<i64: 128, 128>}, {transform_indices = @transform_1, window_bounds = array<i64: 128, 128>}, {transform_indices = @transform_2, window_bounds = array<i64: 128, 1>}, {transform_indices = @transform_3, window_bounds = array<i64: 1, 128>}, {transform_indices = @transform_4, window_bounds = array<i64: 128, 1>}]} {
    %c0_i32 = arith.constant 0 : i32
    %0 = arith.cmpi eq, %arg1, %c0_i32 : i32
    %1 = arith.extui %0 : i1 to i32
    %c0_i32_0 = arith.constant 0 : i32
    %2 = arith.cmpi ne, %1, %c0_i32_0 : i32
    scf.if %2 {
      %cst_35 = arith.constant -1.000000e+30 : f32
      %64 = vector.broadcast %cst_35 : f32 to vector<128x1xf32>
      %c0_36 = arith.constant 0 : index
      %c0_37 = arith.constant 0 : index
      %65 = vector.load %arg7[%c0_36, %c0_37] : memref<128x1xf32, #tpu.memory_space<vmem>>, vector<128x1xf32>
      tpu.vector_store %arg7[%c0_36, %c0_37], %64 {strides = array<i32>} : memref<128x1xf32, #tpu.memory_space<vmem>>, vector<128x1xf32>,
      %cst_38 = arith.constant 0.000000e+00 : f32
      %66 = vector.broadcast %cst_38 : f32 to vector<128x1xf32>
      %c0_39 = arith.constant 0 : index
      %c0_40 = arith.constant 0 : index
      %67 = vector.load %arg8[%c0_39, %c0_40] : memref<128x1xf32, #tpu.memory_space<vmem>>, vector<128x1xf32>
      tpu.vector_store %arg8[%c0_39, %c0_40], %66 {strides = array<i32>} : memref<128x1xf32, #tpu.memory_space<vmem>>, vector<128x1xf32>,
      %cst_41 = arith.constant 0.000000e+00 : f32
      %68 = vector.broadcast %cst_41 : f32 to vector<128x1xf32>
      %c0_42 = arith.constant 0 : index
      %c0_43 = arith.constant 0 : index
      %69 = vector.load %arg9[%c0_42, %c0_43] : memref<128x1xf32, #tpu.memory_space<vmem>>, vector<128x1xf32>
      tpu.vector_store %arg9[%c0_42, %c0_43], %68 {strides = array<i32>} : memref<128x1xf32, #tpu.memory_space<vmem>>, vector<128x1xf32>,
      %cst_44 = arith.constant 0.000000e+00 : f32
      %70 = vector.broadcast %cst_44 : f32 to vector<128x1xf32>
      %c0_45 = arith.constant 0 : index
      %c0_46 = arith.constant 0 : index
      %71 = vector.load %arg10[%c0_45, %c0_46] : memref<128x1xf32, #tpu.memory_space<vmem>>, vector<128x1xf32>
      tpu.vector_store %arg10[%c0_45, %c0_46], %70 {strides = array<i32>} : memref<128x1xf32, #tpu.memory_space<vmem>>, vector<128x1xf32>,
    } else {
    }
    %c0 = arith.constant 0 : index
    %c0_1 = arith.constant 0 : index
    %3 = vector.load %arg2[%c0, %c0_1] : memref<128x128xbf16, #tpu.memory_space<vmem>>, vector<128x128xbf16>
    %c0_2 = arith.constant 0 : index
    %c0_3 = arith.constant 0 : index
    %4 = vector.load %arg3[%c0_2, %c0_3] : memref<128x128xbf16, #tpu.memory_space<vmem>>, vector<128x128xbf16>
    %cst = arith.constant dense<0.000000e+00> : vector<128x128xf32>
    %5 = tpu.matmul %3, %4, %cst {dimension_numbers = #tpu.dot_dimension_numbers<[1], [1], [0], [0], [0, 0, 1, 0], [], []>} : vector<128x128xbf16>, vector<128x128xbf16>, vector<128x128xf32> -> vector<128x128xf32>
    %cst_4 = arith.constant 1.000000e+00 : f32
    %6 = vector.broadcast %cst_4 : f32 to vector<128x128xf32>
    %7 = arith.mulf %5, %6 : vector<128x128xf32>
    %c128_i32 = arith.constant 128 : i32
    %8 = arith.muli %arg0, %c128_i32 : i32
    %9 = tpu.iota {dimensions = array<i32: 0>} : vector<128x128xi32>
    %10 = vector.broadcast %8 : i32 to vector<128x128xi32>
    %11 = arith.addi %10, %9 : vector<128x128xi32>
    %c128_i32_5 = arith.constant 128 : i32
    %12 = arith.muli %arg1, %c128_i32_5 : i32
    %13 = tpu.iota {dimensions = array<i32: 1>} : vector<128x128xi32>
    %14 = vector.broadcast %12 : i32 to vector<128x128xi32>
    %15 = arith.addi %14, %13 : vector<128x128xi32>
    %16 = arith.cmpi eq, %11, %15 : vector<128x128xi32>
    %c300_i32 = arith.constant 300 : i32
    %17 = vector.broadcast %c300_i32 : i32 to vector<128x128xi32>
    %18 = arith.cmpi slt, %15, %17 : vector<128x128xi32>
    %cst_6 = arith.constant dense<true> : vector<128x128xi1>
    %19 = arith.xori %18, %cst_6 : vector<128x128xi1>
    %20 = arith.ori %16, %19 : vector<128x128xi1>
    %cst_7 = arith.constant 0xFF800000 : f32
    %21 = vector.broadcast %cst_7 : f32 to vector<128x128xf32>
    %22 = arith.select %20, %21, %7 : vector<128x128xi1>, vector<128x128xf32>
    %c0_8 = arith.constant 0 : index
    %c0_9 = arith.constant 0 : index
    %23 = vector.load %arg7[%c0_8, %c0_9] : memref<128x1xf32, #tpu.memory_space<vmem>>, vector<128x1xf32>
    %cst_10 = arith.constant dense<0xFF800000> : vector<128xf32>
    %24 = vector.multi_reduction <maximumf>, %22, %cst_10 [1] : vector<128x128xf32> to vector<128xf32>
    %25 = vector.shape_cast %24 : vector<128xf32> to vector<128x1xf32>
    %26 = arith.maximumf %23, %25 : vector<128x1xf32>
    %27 = arith.subf %23, %26 : vector<128x1xf32>
    %28 = math.exp %27 : vector<128x1xf32>
    %29 = vector.broadcast %26 : vector<128x1xf32> to vector<128x128xf32>
    %30 = arith.subf %22, %29 : vector<128x128xf32>
    %31 = math.exp %30 : vector<128x128xf32>
    %c0_11 = arith.constant 0 : index
    %c0_12 = arith.constant 0 : index
    %32 = vector.load %arg8[%c0_11, %c0_12] : memref<128x1xf32, #tpu.memory_space<vmem>>, vector<128x1xf32>
    %33 = arith.mulf %28, %32 : vector<128x1xf32>
    %cst_13 = arith.constant dense<0.000000e+00> : vector<128xf32>
    %34 = vector.multi_reduction <add>, %31, %cst_13 [1] : vector<128x128xf32> to vector<128xf32>
    %35 = vector.shape_cast %34 : vector<128xf32> to vector<128x1xf32>
    %36 = arith.addf %33, %35 : vector<128x1xf32>
    %c0_14 = arith.constant 0 : index
    %c0_15 = arith.constant 0 : index
    %37 = vector.load %arg8[%c0_14, %c0_15] : memref<128x1xf32, #tpu.memory_space<vmem>>, vector<128x1xf32>
    tpu.vector_store %arg8[%c0_14, %c0_15], %36 {strides = array<i32>} : memref<128x1xf32, #tpu.memory_space<vmem>>, vector<128x1xf32>,
    %c0_16 = arith.constant 0 : index
    %c0_17 = arith.constant 0 : index
    %38 = vector.load %arg7[%c0_16, %c0_17] : memref<128x1xf32, #tpu.memory_space<vmem>>, vector<128x1xf32>
    tpu.vector_store %arg7[%c0_16, %c0_17], %26 {strides = array<i32>} : memref<128x1xf32, #tpu.memory_space<vmem>>, vector<128x1xf32>,
    %c0_18 = arith.constant 0 : index
    %c0_19 = arith.constant 0 : index
    %39 = vector.load %arg4[%c0_18, %c0_19] : memref<128x1xi32, #tpu.memory_space<vmem>>, vector<128x1xi32>
    %c0_20 = arith.constant 0 : index
    %c0_21 = arith.constant 0 : index
    %40 = vector.load %arg5[%c0_20, %c0_21] : memref<1x128xi32, #tpu.memory_space<vmem>>, vector<1x128xi32>
    %41 = vector.broadcast %39 : vector<128x1xi32> to vector<128x128xi32>
    %42 = vector.broadcast %40 : vector<1x128xi32> to vector<128x128xi32>
    %43 = arith.cmpi eq, %41, %42 : vector<128x128xi32>
    %cst_22 = arith.constant dense<true> : vector<128x128xi1>
    %44 = arith.xori %16, %cst_22 : vector<128x128xi1>
    %45 = arith.andi %43, %44 : vector<128x128xi1>
    %46 = arith.andi %45, %18 : vector<128x128xi1>
    %c0_23 = arith.constant 0 : index
    %c0_24 = arith.constant 0 : index
    %47 = vector.load %arg10[%c0_23, %c0_24] : memref<128x1xf32, #tpu.memory_space<vmem>>, vector<128x1xf32>
    %48 = arith.extui %46 : vector<128x128xi1> to vector<128x128xi32>
    %49 = arith.sitofp %48 : vector<128x128xi32> to vector<128x128xf32>
    %cst_25 = arith.constant dense<0.000000e+00> : vector<128xf32>
    %50 = vector.multi_reduction <add>, %49, %cst_25 [1] : vector<128x128xf32> to vector<128xf32>
    %51 = vector.shape_cast %50 : vector<128xf32> to vector<128x1xf32>
    %52 = arith.addf %47, %51 : vector<128x1xf32>
    %c0_26 = arith.constant 0 : index
    %c0_27 = arith.constant 0 : index
    %53 = vector.load %arg10[%c0_26, %c0_27] : memref<128x1xf32, #tpu.memory_space<vmem>>, vector<128x1xf32>
    tpu.vector_store %arg10[%c0_26, %c0_27], %52 {strides = array<i32>} : memref<128x1xf32, #tpu.memory_space<vmem>>, vector<128x1xf32>,
    %c0_28 = arith.constant 0 : index
    %c0_29 = arith.constant 0 : index
    %54 = vector.load %arg9[%c0_28, %c0_29] : memref<128x1xf32, #tpu.memory_space<vmem>>, vector<128x1xf32>
    %cst_30 = arith.constant 0.000000e+00 : f32
    %55 = vector.broadcast %cst_30 : f32 to vector<128x128xf32>
    %56 = arith.select %46, %22, %55 : vector<128x128xi1>, vector<128x128xf32>
    %cst_31 = arith.constant dense<0.000000e+00> : vector<128xf32>
    %57 = vector.multi_reduction <add>, %56, %cst_31 [1] : vector<128x128xf32> to vector<128xf32>
    %58 = vector.shape_cast %57 : vector<128xf32> to vector<128x1xf32>
    %59 = arith.addf %54, %58 : vector<128x1xf32>
    %c0_32 = arith.constant 0 : index
    %c0_33 = arith.constant 0 : index
    %60 = vector.load %arg9[%c0_32, %c0_33] : memref<128x1xf32, #tpu.memory_space<vmem>>, vector<128x1xf32>
    tpu.vector_store %arg9[%c0_32, %c0_33], %59 {strides = array<i32>} : memref<128x1xf32, #tpu.memory_space<vmem>>, vector<128x1xf32>,
    %c2_i32 = arith.constant 2 : i32
    %61 = arith.cmpi eq, %arg1, %c2_i32 : i32
    %62 = arith.extui %61 : i1 to i32
    %c0_i32_34 = arith.constant 0 : i32
    %63 = arith.cmpi ne, %62, %c0_i32_34 : i32
    scf.if %63 {
      %c0_35 = arith.constant 0 : index
      %c0_36 = arith.constant 0 : index
      %64 = vector.load %arg7[%c0_35, %c0_36] : memref<128x1xf32, #tpu.memory_space<vmem>>, vector<128x1xf32>
      %c0_37 = arith.constant 0 : index
      %c0_38 = arith.constant 0 : index
      %65 = vector.load %arg8[%c0_37, %c0_38] : memref<128x1xf32, #tpu.memory_space<vmem>>, vector<128x1xf32>
      %66 = math.log %65 : vector<128x1xf32>
      %67 = arith.addf %64, %66 : vector<128x1xf32>
      %c0_39 = arith.constant 0 : index
      %c0_40 = arith.constant 0 : index
      %68 = vector.load %arg10[%c0_39, %c0_40] : memref<128x1xf32, #tpu.memory_space<vmem>>, vector<128x1xf32>
      %cst_41 = arith.constant 0.000000e+00 : f32
      %69 = vector.broadcast %cst_41 : f32 to vector<128x1xf32>
      %70 = arith.cmpf ogt, %68, %69 : vector<128x1xf32>
      %c0_42 = arith.constant 0 : index
      %c0_43 = arith.constant 0 : index
      %71 = vector.load %arg9[%c0_42, %c0_43] : memref<128x1xf32, #tpu.memory_space<vmem>>, vector<128x1xf32>
      %72 = arith.mulf %68, %67 : vector<128x1xf32>
      %73 = arith.subf %71, %72 : vector<128x1xf32>
      %cst_44 = arith.constant 0.000000e+00 : f32
      %74 = vector.broadcast %cst_44 : f32 to vector<128x1xf32>
      %75 = arith.select %70, %73, %74 : vector<128x1xi1>, vector<128x1xf32>
      %cst_45 = arith.constant 9.99999974E-6 : f32
      %76 = vector.broadcast %cst_45 : f32 to vector<128x1xf32>
      %77 = arith.addf %68, %76 : vector<128x1xf32>
      %78 = arith.divf %75, %77 : vector<128x1xf32>
      %c0_46 = arith.constant 0 : index
      %c0_47 = arith.constant 0 : index
      %79 = vector.load %arg6[%c0_46, %c0_47] : memref<128x1xf32, #tpu.memory_space<vmem>>, vector<128x1xf32>
      tpu.vector_store %arg6[%c0_46, %c0_47], %78 {strides = array<i32>} : memref<128x1xf32, #tpu.memory_space<vmem>>, vector<128x1xf32>,
    } else {
    }
    return
  }
  func.func @transform_0(%arg0: i32, %arg1: i32) -> (i32, i32) {
    %c0_i32 = arith.constant 0 : i32
    %c0_i32_0 = arith.constant 0 : i32
    return %arg0, %c0_i32 : i32, i32
  }
  func.func @transform_1(%arg0: i32, %arg1: i32) -> (i32, i32) {
    %c0_i32 = arith.constant 0 : i32
    %c0_i32_0 = arith.constant 0 : i32
    return %arg1, %c0_i32 : i32, i32
  }
  func.func @transform_2(%arg0: i32, %arg1: i32) -> (i32, i32) {
    %c0_i32 = arith.constant 0 : i32
    %c0_i32_0 = arith.constant 0 : i32
    return %arg0, %c0_i32 : i32, i32
  }
  func.func @transform_3(%arg0: i32, %arg1: i32) -> (i32, i32) {
    %c0_i32 = arith.constant 0 : i32
    %c0_i32_0 = arith.constant 0 : i32
    return %c0_i32, %arg1 : i32, i32
  }
  func.func @transform_4(%arg0: i32, %arg1: i32) -> (i32, i32) {
    %c0_i32 = arith.constant 0 : i32
    %c0_i32_0 = arith.constant 0 : i32
    return %arg0, %c0_i32 : i32, i32
  }
}

</mosaic_0001>

<bundles_post_ra>
// kernel: supcon_loss.2
= control target key start
LH: loop header
LB: loop body
LE: loop exit
PB: predicated region body
PF: predicated region fallthrough
CT: control target
= control target key end

     0   :  { %s516_s6 = smov 0   ;;  %s645_s0 = inlined_call_operand.vmem [shape: f32[384,128], index: 0, kind: input, shape index: {}]   ;;  %s646_s1 = inlined_call_operand.vmem [shape: bf16[384,128], index: 1, kind: output, shape index: {}]  }
   0x1 LB: > { %s368_s7 = sadd.s32 4294967295, %s504_s6   ;;  %p372_p0 = scmp.ge.s32.totalorder %s504_s6, 1  ;;  %s504_s6 = sphi %s516_s6, %s11_s6  }
   0x2   : > { %p88_p1 = scmp.lt.s32.totalorder %s504_s6, 4 }
   0x4   : > { %p89_p2 = pnand %p372_p0, %p88_p1 }
   0x5   : > { %s373_s8 = sshll.u32 (!%p89_p2), %s368_s7, 4 }
   0x6   : > { %92 = sbr.rel (%p89_p2) target bundleno = 208 (0xd0), region = 24  ;;  %p109_p3 = scmp.lt.s32.totalorder (!%p89_p2), %s373_s8, 47 }
   0xd   : > { %s648_s8 = smov (!%p109_p3, %s373_s8), 47 }
   0xe   : > { %s374_s9 = sshll.u32 %s648_s8, 3  ;;  %s376_s13 = sshll.u32 %s648_s8, 2 }
   0xf   : > { %s530_s12 = scalar_lea.vmem %s645_s0, %s374_s9  ;;  %s619_s16 = scalar_lea.vmem %s646_s1, %s376_s13 }
  0x10   : > { %v533_v0 = vld [vmem:[%s530_s12 + $0x10] sm:$0xff]  ;;  %v536_v1 = vld [vmem:[%s530_s12] sm:$0xff]  ;;  %v539_v2 = vld [vmem:[%s530_s12 + $0x18] sm:$0xff] }
  0x11   : > { %v138_v3 = vmul.f32 %v533_v0, %v533_v0  ;;  %v136_v4 = vmul.f32 %v536_v1, %v536_v1  ;;  %v546_v5 = vld [vmem:[%s530_s12 + $0x8] sm:$0xff]  ;;  %v139_v6 = vmul.f32 %v539_v2, %v539_v2  ;;  %v556_v9 = vld [vmem:[%s530_s12 + $0x20] sm:$0xff]  ;;  %v563_v12 = vld [vmem:[%s530_s12 + $0x38] sm:$0xff] }
  0x12   : > { %v137_v7 = vmul.f32 %v546_v5, %v546_v5  ;;  %v553_v8 = vld [vmem:[%s530_s12 + $0x28] sm:$0xff]  ;;  %v140_v11 = vmul.f32 %v556_v9, %v556_v9  ;;  %v566_v13 = vld [vmem:[%s530_s12 + $0x30] sm:$0xff]  ;;  %v143_v14 = vmul.f32 %v563_v12, %v563_v12  ;;  %v576_v17 = vld [vmem:[%s530_s12 + $0x40] sm:$0xff] }
  0x13   : > { %156 = vadd.xlane.f32.xlu1 %v138_v3  ;;  %152 = vadd.xlane.f32.xlu0 %v136_v4  ;;  %v141_v10 = vmul.f32 %v553_v8, %v553_v8  ;;  %v142_v15 = vmul.f32 %v566_v13, %v566_v13  ;;  %v573_v16 = vld [vmem:[%s530_s12 + $0x48] sm:$0xff]  ;;  %v144_v19 = vmul.f32 %v576_v17, %v576_v17  ;;  %v583_v20 = vld [vmem:[%s530_s12 + $0x58] sm:$0xff]  ;;  %v586_v21 = vld [vmem:[%s530_s12 + $0x50] sm:$0xff] }
  0x14   : > { %v145_v18 = vmul.f32 %v573_v16, %v573_v16  ;;  %v147_v22 = vmul.f32 %v583_v20, %v583_v20  ;;  %v146_v23 = vmul.f32 %v586_v21, %v586_v21  ;;  %v593_v24 = vld [vmem:[%s530_s12 + $0x68] sm:$0xff]  ;;  %v596_v25 = vld [vmem:[%s530_s12 + $0x60] sm:$0xff]  ;;  %v603_v28 = vld [vmem:[%s530_s12 + $0x78] sm:$0xff] }
  0x15   : > { %v149_v26 = vmul.f32 %v593_v24, %v593_v24  ;;  %v148_v27 = vmul.f32 %v596_v25, %v596_v25  ;;  %v606_v29 = vld [vmem:[%s530_s12 + $0x70] sm:$0xff]  ;;  %v151_v30 = vmul.f32 %v603_v28, %v603_v28 }
  0x16   : > { %v150_v31 = vmul.f32 %v606_v29, %v606_v29 }
  0x17   : > { %158 = vadd.xlane.f32.xlu1 %v139_v6  ;;  %154 = vadd.xlane.f32.xlu0 %v137_v7 }
  0x1b   : > { %162 = vadd.xlane.f32.xlu1 %v141_v10  ;;  %160 = vadd.xlane.f32.xlu0 %v140_v11 }
  0x1f   : > { %166 = vadd.xlane.f32.xlu1 %v143_v14  ;;  %164 = vadd.xlane.f32.xlu0 %v142_v15 }
  0x23   : > { %170 = vadd.xlane.f32.xlu1 %v145_v18  ;;  %168 = vadd.xlane.f32.xlu0 %v144_v19 }
  0x27   : > { %174 = vadd.xlane.f32.xlu1 %v147_v22  ;;  %172 = vadd.xlane.f32.xlu0 %v146_v23 }
  0x2b   : > { %178 = vadd.xlane.f32.xlu1 %v149_v26  ;;  %176 = vadd.xlane.f32.xlu0 %v148_v27 }
  0x2f   : > { %182 = vadd.xlane.f32.xlu1 %v151_v30  ;;  %180 = vadd.xlane.f32.xlu0 %v150_v31 }
  0xa0   : > { %v157_v32 = vpop.xlane.xlu1 %156  ;;  %v153_v33 = vpop.xlane.xlu0 %152 }
  0xa1   : > { %v186_v34 = vmax.f32 %v157_v32, 1e-24  ;;  %v184_v35 = vmax.f32 %v153_v33, 1e-24 }
  0xa3   : > { %466 = vrsqrt.f32 %v186_v34 }
  0xa4   : > { %v159_v36 = vpop.xlane.xlu1 %158  ;;  %v155_v37 = vpop.xlane.xlu0 %154  ;;  %468 = vrsqrt.f32 %v184_v35 }
  0xa5   : > { %v187_v38 = vmax.f32 %v159_v36, 1e-24  ;;  %v185_v39 = vmax.f32 %v155_v37, 1e-24 }
  0xa7   : > { %470 = vrsqrt.f32 %v187_v38 }
  0xa8   : > { %472 = vrsqrt.f32 %v185_v39  ;;  %v163_v40 = vpop.xlane.xlu1 %162  ;;  %v161_v41 = vpop.xlane.xlu0 %160 }
  0xa9   : > { %v189_v42 = vmax.f32 %v163_v40, 1e-24  ;;  %v188_v43 = vmax.f32 %v161_v41, 1e-24 }
  0xab   : > { %474 = vrsqrt.f32 %v189_v42 }
  0xac   : > { %476 = vrsqrt.f32 %v188_v43  ;;  %v167_v44 = vpop.xlane.xlu1 %166  ;;  %v165_v45 = vpop.xlane.xlu0 %164 }
  0xad   : > { %v191_v46 = vmax.f32 %v167_v44, 1e-24  ;;  %v190_v47 = vmax.f32 %v165_v45, 1e-24  ;;  %v467_v48 = vpop.eup %466 }
  0xae   : > { %v469_v49 = vpop.eup %468  ;;  %v218_v56 = vmul.f32 %v467_v48, %v533_v0 }
  0xaf   : > { %478 = vrsqrt.f32 %v191_v46  ;;  %v216_v58 = vmul.f32 %v469_v49, %v536_v1 }
  0xb0   : > { %480 = vrsqrt.f32 %v190_v47  ;;  %v171_v50 = vpop.xlane.xlu1 %170  ;;  %v169_v51 = vpop.xlane.xlu0 %168 }
  0xb1   : > { %v471_v52 = vpop.eup %470  ;;  %v193_v53 = vmax.f32 %v171_v50, 1e-24  ;;  %v192_v54 = vmax.f32 %v169_v51, 1e-24 }
  0xb2   : > { %v473_v55 = vpop.eup %472  ;;  %v219_v57 = vmul.f32 %v471_v52, %v539_v2 }
  0xb3   : > { %v217_v59 = vmul.f32 %v473_v55, %v546_v5  ;;  %482 = vrsqrt.f32 %v193_v53 }
  0xb4   : > { %v419_v60 = vpack.c.bf16 %v219_v57, %v218_v56  ;;  %484 = vrsqrt.f32 %v192_v54  ;;  %v175_v61 = vpop.xlane.xlu1 %174  ;;  %v173_v62 = vpop.xlane.xlu0 %172 }
  0xb5   : > { %v475_v63 = vpop.eup %474  ;;  %v414_v0 = vpack.c.bf16 %v217_v59, %v216_v58  ;;  %v195_v3 = vmax.f32 %v175_v61, 1e-24  ;;  %v194_v2 = vmax.f32 %v173_v62, 1e-24 }
  0xb6   : > { %v477_v1 = vpop.eup %476  ;;  %451 = vst [vmem:[%s619_s16 + $0x8] sm:$0xff] %v419_v60   ;;  %v221_v4 = vmul.f32 %v475_v63, %v553_v8 }
  0xb7   : > { %415 = vst [vmem:[%s619_s16] sm:$0xff] %v414_v0   ;;  %v220_v6 = vmul.f32 %v477_v1, %v556_v9  ;;  %486 = vrsqrt.f32 %v195_v3 }
  0xb8   : > { %488 = vrsqrt.f32 %v194_v2  ;;  %v179_v5 = vpop.xlane.xlu1 %178  ;;  %v177_v7 = vpop.xlane.xlu0 %176 }
  0xb9   : > { %v479_v10 = vpop.eup %478  ;;  %v424_v11 = vpack.c.bf16 %v221_v4, %v220_v6  ;;  %v197_v14 = vmax.f32 %v179_v5, 1e-24  ;;  %v196_v15 = vmax.f32 %v177_v7, 1e-24 }
  0xba   : > { %v481_v18 = vpop.eup %480  ;;  %v223_v19 = vmul.f32 %v479_v10, %v563_v12 }
  0xbb   : > { %452 = vst [vmem:[%s619_s16 + $0x10] sm:$0xff] %v424_v11   ;;  %v222_v22 = vmul.f32 %v481_v18, %v566_v13  ;;  %490 = vrsqrt.f32 %v197_v14 }
  0xbc   : > { %492 = vrsqrt.f32 %v196_v15  ;;  %v183_v8 = vpop.xlane.xlu1 %182  ;;  %v181_v9 = vpop.xlane.xlu0 %180 }
  0xbd   : > { %v483_v23 = vpop.eup %482  ;;  %v429_v26 = vpack.c.bf16 %v223_v19, %v222_v22  ;;  %v199_v27 = vmax.f32 %v183_v8, 1e-24  ;;  %v198_v30 = vmax.f32 %v181_v9, 1e-24 }
  0xbe   : > { %v485_v31 = vpop.eup %484  ;;  %v225_v32 = vmul.f32 %v483_v23, %v573_v16 }
  0xbf   : > { %453 = vst [vmem:[%s619_s16 + $0x18] sm:$0xff] %v429_v26   ;;  %v224_v33 = vmul.f32 %v485_v31, %v576_v17  ;;  %494 = vrsqrt.f32 %v199_v27 }
  0xc0   : > { %496 = vrsqrt.f32 %v198_v30 }
  0xc1   : > { %v487_v12 = vpop.eup %486  ;;  %v434_v13 = vpack.c.bf16 %v225_v32, %v224_v33 }
  0xc2   : > { %v489_v34 = vpop.eup %488  ;;  %v227_v35 = vmul.f32 %v487_v12, %v583_v20 }
  0xc3   : > { %454 = vst [vmem:[%s619_s16 + $0x20] sm:$0xff] %v434_v13   ;;  %v226_v36 = vmul.f32 %v489_v34, %v586_v21 }
  0xc5   : > { %v491_v37 = vpop.eup %490  ;;  %v439_v38 = vpack.c.bf16 %v227_v35, %v226_v36 }
  0xc6   : > { %v493_v39 = vpop.eup %492  ;;  %v229_v16 = vmul.f32 %v491_v37, %v593_v24 }
  0xc7   : > { %455 = vst [vmem:[%s619_s16 + $0x28] sm:$0xff] %v439_v38   ;;  %v228_v17 = vmul.f32 %v493_v39, %v596_v25 }
  0xc9   : > { %v495_v40 = vpop.eup %494  ;;  %v444_v41 = vpack.c.bf16 %v229_v16, %v228_v17 }
  0xca   : > { %v497_v42 = vpop.eup %496  ;;  %v231_v43 = vmul.f32 %v495_v40, %v603_v28 }
  0xcb   : > { %456 = vst [vmem:[%s619_s16 + $0x30] sm:$0xff] %v444_v41   ;;  %v230_v20 = vmul.f32 %v497_v42, %v606_v29 }
  0xcd   : > { %v449_v44 = vpack.c.bf16 %v231_v43, %v230_v20 }
  0xcf   : > { %457 = vst [vmem:[%s619_s16 + $0x38] sm:$0xff] %v449_v44  }
  0xd0 PF: > { %s11_s6 = sadd.s32 1, %s504_s6  }
  0xd1   : > { %p8_p4 = scmp.ge.s32.totalorder %s11_s6, 5  }
  0xd3   :  { %10 = sbr.rel (!%p8_p4) target bundleno = 1 (0x1), region = 54 }

// kernel: supcon_loss.3
= control target key start
LH: loop header
LB: loop body
LE: loop exit
PB: predicated region body
PF: predicated region fallthrough
CT: control target
= control target key end

     0   :  { %s2072_s15 = smov 0   ;;  %s2074_s16 = smov 0   ;;  %s3315_s0 = inlined_call_operand.vmem [shape: bf16[384,128], index: 0, kind: input, shape index: {}, may-alias: {0,1}]   ;;  %s3316_s1 = inlined_call_operand.vmem [shape: bf16[384,128], index: 1, kind: input, shape index: {}, may-alias: {0,1}]   ;;  %s3317_s2 = inlined_call_operand.vmem [shape: s32[384,1], index: 2, kind: input, shape index: {}]   ;;  %s3318_s3 = inlined_call_operand.vmem [shape: s32[1,384], index: 3, kind: input, shape index: {}]   ;;  %s3319_s4 = inlined_call_operand.vmem [shape: f32[384,1], index: 4, kind: output, shape index: {}]  }
   0x1   :  { %s2076_s17 = smov 0   ;;  %s2078_s18 = smov 0  }
   0x2   :  { %s2080_s19 = smov 0  }
   0x3 LB: > { %s23_s20 = sadd.s32 1, %s2032_s17  ;;  %s26_s21 = sadd.s32 1, %s2036_s18  ;;  %s2040_s19 = sphi %s2080_s19, %s14_s19   ;;  %s2036_s18 = sphi %s2078_s18, %s3505_s18   ;;  %s2032_s17 = sphi %s2076_s17, %s3504_s17   ;;  %s2028_s16 = sphi %s2074_s16, %s3503_s16   ;;  %s2024_s15 = sphi %s2072_s15, %s3502_s15  }
   0x4   : > { %p24_p0 = scmp.ge.s32.totalorder %s23_s20, 3  ;;  %p1699_p1 = scmp.ge.s32.totalorder %s2040_s19, 1 }
   0x5   : > { %p205_p2 = scmp.lt.s32.totalorder %s2040_s19, 10 }
   0x6   : > { %s3507_s20 = smov (%p24_p0, %s23_s20), 0  ;;  %s3509_s21 = smov (!%p24_p0, %s26_s21), %s2036_s18 }
   0x7   : > { %p206_p3 = pnand %p1699_p1, %p205_p2  ;;  %p28_p4 = scmp.ge.s32.totalorder %s3509_s21, 3 }
   0x9   : > { %s3511_s21 = smov (%p28_p4, %s3509_s21), 0  ;;  %209 = sbr.rel (%p206_p3) target bundleno = 896 (0x380), region = 36 }
  0x10   : > { %s1700_s22 = sshll.u32 %s2028_s16, 4  ;;  %s1702_s23 = sshll.u32 %s2024_s15, 4 }
  0x11   : > { %p245_p5 = scmp.lt.s32.totalorder %s1700_s22, 47  ;;  %p251_p6 = scmp.lt.s32.totalorder %s1702_s23, 47 }
  0x12   : > { %p262_p7 = scmp.lt.s32.totalorder %s2024_s15, 2  ;;  %p1708_p8 = scmp.ne.s32.totalorder %s2024_s15, 0 }
  0x13   : > { %s3513_s22 = smov (!%p245_p5, %s1700_s22), 47  ;;  %s3515_s23 = smov (!%p251_p6, %s1702_s23), 47 }
  0x14   : > { %s1701_s24 = sshll.u32 %s3513_s22, 2  ;;  %s1705_s25 = sshll.u32 %s3513_s22, 3  ;;  %vm276_vm0 = vcmask (!%p1708_p8), 7168   ;;  %v2042_v0 = vmov (!%p1708_p8), -1e+30   ;;  %v2043_v1 = vmov (!%p1708_p8), 0.0  }
  0x15   : > { %s2112_s28 = scalar_lea.vmem %s3315_s0, %s1701_s24  ;;  %s1703_s29 = sshll.u32 %s3515_s23, 2  ;;  %277 = vst.msk [vmem:[#allocation2] sm:$0xff] (!%p1708_p8), %vm276_vm0, %v2042_v0  ;;  %278 = vst.msk [vmem:[#allocation2 + $0x8] sm:$0xff] (!%p1708_p8), %vm276_vm0, %v2042_v0 }
  0x16   : > { %s2117_s6 = scalar_lea.vmem %s3316_s1, %s1703_s29  ;;  %s2122_s9 = scalar_lea.vmem %s3317_s2, %s1705_s25  ;;  %279 = vst.msk [vmem:[#allocation2 + $0x10] sm:$0xff] (!%p1708_p8), %vm276_vm0, %v2042_v0  ;;  %280 = vst.msk [vmem:[#allocation2 + $0x18] sm:$0xff] (!%p1708_p8), %vm276_vm0, %v2042_v0 }
  0x17   : > { %s2125_s10 = scalar_select %p262_p7, %s2024_s15, 2 }
  0x18   : > { %s2130_s13 = scalar_lea.vmem %s3319_s4, %s1705_s25  ;;  %275 = sbr.rel (%p1708_p8) target bundleno = 54 (0x36), region = 40  ;;  %281 = vst.msk [vmem:[#allocation2 + $0x20] sm:$0xff] (!%p1708_p8), %vm276_vm0, %v2042_v0  ;;  %282 = vst.msk [vmem:[#allocation2 + $0x28] sm:$0xff] (!%p1708_p8), %vm276_vm0, %v2042_v0 }
  0x19   : > { %s264_s23 = scalar_lea.vmem %s3318_s3, %s2125_s10  ;;  %283 = vst.msk [vmem:[#allocation2 + $0x30] sm:$0xff] (!%p1708_p8), %vm276_vm0, %v2042_v0  ;;  %284 = vst.msk [vmem:[#allocation2 + $0x38] sm:$0xff] (!%p1708_p8), %vm276_vm0, %v2042_v0 }
  0x1a   : > { %285 = vst.msk [vmem:[#allocation2 + $0x40] sm:$0xff] (!%p1708_p8), %vm276_vm0, %v2042_v0  ;;  %286 = vst.msk [vmem:[#allocation2 + $0x48] sm:$0xff] (!%p1708_p8), %vm276_vm0, %v2042_v0 }
  0x1b   : > { %287 = vst.msk [vmem:[#allocation2 + $0x50] sm:$0xff] (!%p1708_p8), %vm276_vm0, %v2042_v0  ;;  %288 = vst.msk [vmem:[#allocation2 + $0x58] sm:$0xff] (!%p1708_p8), %vm276_vm0, %v2042_v0 }
  0x1c   : > { %289 = vst.msk [vmem:[#allocation2 + $0x60] sm:$0xff] (!%p1708_p8), %vm276_vm0, %v2042_v0  ;;  %290 = vst.msk [vmem:[#allocation2 + $0x68] sm:$0xff] (!%p1708_p8), %vm276_vm0, %v2042_v0 }
  0x1d   : > { %291 = vst.msk [vmem:[#allocation2 + $0x70] sm:$0xff] (!%p1708_p8), %vm276_vm0, %v2042_v0  ;;  %292 = vst.msk [vmem:[#allocation2 + $0x78] sm:$0xff] (!%p1708_p8), %vm276_vm0, %v2042_v0 }
  0x1e   : > { %293 = vst.msk [vmem:[#allocation3] sm:$0xff] (!%p1708_p8), %vm276_vm0, %v2043_v1  ;;  %294 = vst.msk [vmem:[#allocation3 + $0x8] sm:$0xff] (!%p1708_p8), %vm276_vm0, %v2043_v1 }
  0x1f   : > { %295 = vst.msk [vmem:[#allocation3 + $0x10] sm:$0xff] %vm276_vm0, %v2043_v1  ;;  %296 = vst.msk [vmem:[#allocation3 + $0x18] sm:$0xff] %vm276_vm0, %v2043_v1 }
  0x20   : > { %297 = vst.msk [vmem:[#allocation3 + $0x20] sm:$0xff] %vm276_vm0, %v2043_v1  ;;  %298 = vst.msk [vmem:[#allocation3 + $0x28] sm:$0xff] %vm276_vm0, %v2043_v1 }
  0x21   : > { %299 = vst.msk [vmem:[#allocation3 + $0x30] sm:$0xff] %vm276_vm0, %v2043_v1  ;;  %300 = vst.msk [vmem:[#allocation3 + $0x38] sm:$0xff] %vm276_vm0, %v2043_v1 }
  0x22   : > { %301 = vst.msk [vmem:[#allocation3 + $0x40] sm:$0xff] %vm276_vm0, %v2043_v1  ;;  %302 = vst.msk [vmem:[#allocation3 + $0x48] sm:$0xff] %vm276_vm0, %v2043_v1 }
  0x23   : > { %303 = vst.msk [vmem:[#allocation3 + $0x50] sm:$0xff] %vm276_vm0, %v2043_v1  ;;  %304 = vst.msk [vmem:[#allocation3 + $0x58] sm:$0xff] %vm276_vm0, %v2043_v1 }
  0x24   : > { %305 = vst.msk [vmem:[#allocation3 + $0x60] sm:$0xff] %vm276_vm0, %v2043_v1  ;;  %306 = vst.msk [vmem:[#allocation3 + $0x68] sm:$0xff] %vm276_vm0, %v2043_v1 }
  0x25   : > { %307 = vst.msk [vmem:[#allocation3 + $0x70] sm:$0xff] %vm276_vm0, %v2043_v1  ;;  %308 = vst.msk [vmem:[#allocation3 + $0x78] sm:$0xff] %vm276_vm0, %v2043_v1 }
  0x26   : > { %309 = vst.msk [vmem:[#allocation4] sm:$0xff] %vm276_vm0, %v2043_v1  ;;  %310 = vst.msk [vmem:[#allocation4 + $0x8] sm:$0xff] %vm276_vm0, %v2043_v1 }
  0x27   : > { %311 = vst.msk [vmem:[#allocation4 + $0x10] sm:$0xff] %vm276_vm0, %v2043_v1  ;;  %312 = vst.msk [vmem:[#allocation4 + $0x18] sm:$0xff] %vm276_vm0, %v2043_v1 }
  0x28   : > { %313 = vst.msk [vmem:[#allocation4 + $0x20] sm:$0xff] %vm276_vm0, %v2043_v1  ;;  %314 = vst.msk [vmem:[#allocation4 + $0x28] sm:$0xff] %vm276_vm0, %v2043_v1 }
  0x29   : > { %315 = vst.msk [vmem:[#allocation4 + $0x30] sm:$0xff] %vm276_vm0, %v2043_v1  ;;  %316 = vst.msk [vmem:[#allocation4 + $0x38] sm:$0xff] %vm276_vm0, %v2043_v1 }
  0x2a   : > { %317 = vst.msk [vmem:[#allocation4 + $0x40] sm:$0xff] %vm276_vm0, %v2043_v1  ;;  %318 = vst.msk [vmem:[#allocation4 + $0x48] sm:$0xff] %vm276_vm0, %v2043_v1 }
  0x2b   : > { %319 = vst.msk [vmem:[#allocation4 + $0x50] sm:$0xff] %vm276_vm0, %v2043_v1  ;;  %320 = vst.msk [vmem:[#allocation4 + $0x58] sm:$0xff] %vm276_vm0, %v2043_v1 }
  0x2c   : > { %321 = vst.msk [vmem:[#allocation4 + $0x60] sm:$0xff] %vm276_vm0, %v2043_v1  ;;  %322 = vst.msk [vmem:[#allocation4 + $0x68] sm:$0xff] %vm276_vm0, %v2043_v1 }
  0x2d   : > { %323 = vst.msk [vmem:[#allocation4 + $0x70] sm:$0xff] %vm276_vm0, %v2043_v1  ;;  %324 = vst.msk [vmem:[#allocation4 + $0x78] sm:$0xff] %vm276_vm0, %v2043_v1 }
  0x2e   : > { %325 = vst.msk [vmem:[#allocation5] sm:$0xff] %vm276_vm0, %v2043_v1  ;;  %326 = vst.msk [vmem:[#allocation5 + $0x8] sm:$0xff] %vm276_vm0, %v2043_v1 }
  0x2f   : > { %327 = vst.msk [vmem:[#allocation5 + $0x10] sm:$0xff] %vm276_vm0, %v2043_v1  ;;  %328 = vst.msk [vmem:[#allocation5 + $0x18] sm:$0xff] %vm276_vm0, %v2043_v1 }
  0x30   : > { %329 = vst.msk [vmem:[#allocation5 + $0x20] sm:$0xff] %vm276_vm0, %v2043_v1  ;;  %330 = vst.msk [vmem:[#allocation5 + $0x28] sm:$0xff] %vm276_vm0, %v2043_v1 }
  0x31   : > { %331 = vst.msk [vmem:[#allocation5 + $0x30] sm:$0xff] %vm276_vm0, %v2043_v1  ;;  %332 = vst.msk [vmem:[#allocation5 + $0x38] sm:$0xff] %vm276_vm0, %v2043_v1 }
  0x32   : > { %333 = vst.msk [vmem:[#allocation5 + $0x40] sm:$0xff] %vm276_vm0, %v2043_v1  ;;  %334 = vst.msk [vmem:[#allocation5 + $0x48] sm:$0xff] %vm276_vm0, %v2043_v1 }
  0x33   : > { %335 = vst.msk [vmem:[#allocation5 + $0x50] sm:$0xff] %vm276_vm0, %v2043_v1  ;;  %336 = vst.msk [vmem:[#allocation5 + $0x58] sm:$0xff] %vm276_vm0, %v2043_v1 }
  0x34   : > { %337 = vst.msk [vmem:[#allocation5 + $0x60] sm:$0xff] %vm276_vm0, %v2043_v1  ;;  %338 = vst.msk [vmem:[#allocation5 + $0x68] sm:$0xff] %vm276_vm0, %v2043_v1 }
  0x35   : > { %339 = vst.msk [vmem:[#allocation5 + $0x70] sm:$0xff] %vm276_vm0, %v2043_v1  ;;  %340 = vst.msk [vmem:[#allocation5 + $0x78] sm:$0xff] %vm276_vm0, %v2043_v1 }
  0x36 PF: > { %v1858_v2 = vld [vmem:[%s2117_s6] sm:$0xff]   ;;  %v1859_v3 = vld [vmem:[%s2117_s6 + $0x8] sm:$0xff]   ;;  %v2044_v4 = vmov 0   ;;  %v1860_v5 = vld [vmem:[%s2117_s6 + $0x10] sm:$0xff]   ;;  %v567_v26 = vlaneseq  ;;  %s1726_s24 = sshll.u32 %s2024_s15, 7  ;;  %s1725_s25 = sshll.u32 %s2028_s16, 7 }
  0x37   : > { %1857 = vset.pattern.permute.xlu1 %v2044_v4  ;;  %1856 = vset.pattern.permute.xlu0 %v2044_v4  ;;  %v1866_v6 = vld [vmem:[%s2112_s28] sm:$0xff]   ;;  %v1861_v8 = vld [vmem:[%s2117_s6 + $0x18] sm:$0xff]   ;;  %v1010_v9 = vld [vmem:[%s2122_s9 + $0x8] sm:$0xff]  ;;  %v604_v31 = vstv %s1726_s24  ;;  %vm3330_vm5 = vmmov 1   ;;  %p1744_p9 = scmp.ne.s32.totalorder %s2024_s15, 2 }
  0x38   : > { %1763 = vmatprep.subr.bf16.mxu0 %v1858_v2  ;;  %1795 = vmatprep.subr.bf16.mxu1 %v1858_v2  ;;  %v1867_v7 = vld [vmem:[%s2112_s28 + $0x20] sm:$0xff]   ;;  %v1011_v11 = vld [vmem:[%s2122_s9 + $0x10] sm:$0xff]  ;;  %v1012_v12 = vld [vmem:[%s2122_s9 + $0x18] sm:$0xff]  ;;  %v2228_v29 = vshrl.u32 %v567_v26, 7  ;;  %v603_v30 = vand.u32 127, %v567_v26  ;;  %v2231_v33 = vstv %s1725_s25 }
  0x39   : > { %1764 = vmatpush3.bf16.xpose.msra.mxu0 %v1858_v2  ;;  %1803 = vmatpush3.bf16.xpose.msra.mxu1 %v1858_v2  ;;  %v1009_v10 = vld [vmem:[%s2122_s9] sm:$0xff]  ;;  %v1014_v14 = vld [vmem:[%s2122_s9 + $0x28] sm:$0xff]  ;;  %v1015_v16 = vld [vmem:[%s2122_s9 + $0x30] sm:$0xff] }
  0x3a   : > { %1765 = vmatprep.subr.bf16.mxu0 %v1859_v3  ;;  %1796 = vmatprep.subr.bf16.mxu1 %v1859_v3  ;;  %v1013_v13 = vld [vmem:[%s2122_s9 + $0x20] sm:$0xff]  ;;  %v1016_v17 = vld [vmem:[%s2122_s9 + $0x38] sm:$0xff]  ;;  %v1018_v19 = vld [vmem:[%s2122_s9 + $0x48] sm:$0xff]  ;;  %v583_v32 = vadd.s32 120, %v2228_v29  ;;  %v2234_v35 = vadd.s32 %v604_v31, %v603_v30  ;;  %v571_v43 = vadd.s32 24, %v2228_v29  ;;  %v569_v44 = vadd.s32 8, %v2228_v29 }
  0x3b   : > { %1779 = vmatprep.mubr.bf16.mxu0 %v1866_v6  ;;  %1787 = vmatprep.mubr.bf16.mxu1 %v1867_v7  ;;  %v1862_v15 = vld [vmem:[%s2117_s6 + $0x20] sm:$0xff]   ;;  %v1863_v20 = vld [vmem:[%s2117_s6 + $0x28] sm:$0xff]   ;;  %v1019_v21 = vld [vmem:[%s2122_s9 + $0x50] sm:$0xff]  ;;  %v572_v45 = vadd.s32 32, %v2228_v29  ;;  %v2252_v46 = vadd.s32 %v2231_v33, %v2228_v29  ;;  %v573_v47 = vadd.s32 40, %v2228_v29  ;;  %v570_v49 = vadd.s32 16, %v2228_v29 }
  0x3c   : > { %1030 = vperm.xlu1 %1857, %v1010_v9   ;;  %1027 = vperm.xlu0 %1856, %v1009_v10   ;;  %v1017_v18 = vld [vmem:[%s2122_s9 + $0x40] sm:$0xff]  ;;  %v1020_v22 = vld [vmem:[%s2122_s9 + $0x58] sm:$0xff]  ;;  %v1022_v24 = vld [vmem:[%s2122_s9 + $0x68] sm:$0xff]  ;;  %v2237_v36 = vadd.s32 %v2231_v33, %v583_v32  ;;  %v2256_v48 = vadd.s32 %v2231_v33, %v571_v43  ;;  %v2260_v50 = vadd.s32 %v2231_v33, %v569_v44  ;;  %v574_v52 = vadd.s32 48, %v2228_v29 }
  0x3d   : > { %v1021_v23 = vld [vmem:[%s2122_s9 + $0x60] sm:$0xff]  ;;  %v1864_v25 = vld [vmem:[%s2117_s6 + $0x30] sm:$0xff]   ;;  %v1024_v28 = vld [vmem:[%s2122_s9 + $0x78] sm:$0xff]  ;;  %v2263_v51 = vadd.s32 %v2231_v33, %v572_v45  ;;  %vm3324_vm2 = vcmp.eq.s32.totalorder %v2252_v46, %v2234_v35  ;;  %v2269_v53 = vadd.s32 %v2231_v33, %v573_v47  ;;  %v575_v54 = vadd.s32 56, %v2228_v29 }
  0x3e   : > { %v1023_v27 = vld [vmem:[%s2122_s9 + $0x70] sm:$0xff]  ;;  %v1865_v34 = vld [vmem:[%s2117_s6 + $0x38] sm:$0xff]   ;;  %v1868_v37 = vld [vmem:[%s2112_s28 + $0x8] sm:$0xff]   ;;  %vm3323_vm3 = vcmp.eq.s32.totalorder %v2256_v48, %v2234_v35  ;;  %v2275_v55 = vadd.s32 %v2231_v33, %v570_v49  ;;  %vm3322_vm4 = vcmp.eq.s32.totalorder %v2260_v50, %v2234_v35  ;;  %v576_v56 = vadd.s32 64, %v2228_v29 }
  0x3f   : > { %v1869_v38 = vld [vmem:[%s2112_s28 + $0x28] sm:$0xff]   ;;  %v1870_v39 = vld [vmem:[%s2112_s28 + $0x10] sm:$0xff]   ;;  %v1872_v41 = vld [vmem:[%s2112_s28 + $0x18] sm:$0xff]   ;;  %vm3320_vm7 = vcmp.eq.s32.totalorder %v2263_v51, %v2234_v35  ;;  %v2291_v58 = vadd.s32 %v2231_v33, %v574_v52  ;;  %v577_v59 = vadd.s32 72, %v2228_v29  ;;  %vm3321_vm9 = vcmp.eq.s32.totalorder %v2269_v53, %v2234_v35 }
  0x40   : > { %1033 = vperm.xlu1 %1857, %v1011_v11   ;;  %1036 = vperm.xlu0 %1856, %v1012_v12   ;;  %v1871_v40 = vld [vmem:[%s2112_s28 + $0x30] sm:$0xff]   ;;  %v1873_v42 = vld [vmem:[%s2112_s28 + $0x38] sm:$0xff]   ;;  %vm2284_vm6 = vmxor %vm3324_vm2, %vm3330_vm5  ;;  %v2305_v61 = vadd.s32 %v2231_v33, %v575_v54  ;;  %vm3325_vm11 = vcmp.eq.s32.totalorder %v2275_v55, %v2234_v35  ;;  %v2333_v1 = vadd.s32 %v2231_v33, %v576_v56  ;;  %v578_v6 = vadd.s32 80, %v2228_v29 }
  0x41   : > { %1766 = vmatpush3.bf16.xpose.msra.mxu0 %v1859_v3  ;;  %1804 = vmatpush3.bf16.xpose.msra.mxu1 %v1859_v3  ;;  %vm2298_vm8 = vmxor %vm3323_vm3, %vm3330_vm5  ;;  %v2312_v62 = vld [vmem:[%s264_s23] ss:$0 sm:$0xff]  ;;  %vm3327_vm14 = vcmp.eq.s32.totalorder %v2291_v58, %v2234_v35  ;;  %v579_v7 = vadd.s32 88, %v2228_v29  ;;  %v582_v31 = vadd.s32 112, %v2228_v29  ;;  %v3393_v45 = vmov 0 }
  0x42   : > { %1767 = vmatprep.subr.bf16.mxu0 %v1860_v5  ;;  %1797 = vmatprep.subr.bf16.mxu1 %v1860_v5  ;;  %vm2318_vm10 = vmxor %vm3322_vm4, %vm3330_vm5  ;;  %vm3326_vm4 = vcmp.eq.s32.totalorder %v2305_v61, %v2234_v35  ;;  %vm3328_vm1 = vcmp.eq.s32.totalorder %v2333_v1, %v2234_v35  ;;  %v3399_v54 = vmov 0 }
  0x43   : > { %vm2328_vm12 = vmxor %vm3320_vm7, %vm3330_vm5  ;;  %vm3329_vm7 = vcmp.lt.s32.totalorder %v2234_v35, 300  ;;  %v2507_v43 = vadd.s32 %v2231_v33, %v582_v31  ;;  %v1145_v31 = vld [vmem:[#allocation5 + $0x18] sm:$0xff] }
  0x44   : > { %1039 = vperm.xlu1 %1857, %v1013_v13   ;;  %1042 = vperm.xlu0 %1856, %v1014_v14   ;;  %vm2339_vm13 = vmxor %vm3321_vm9, %vm3330_vm5  ;;  %v3365_v13 = vmov 0 }
  0x45   : > { %vm2357_vm9 = vmxor %vm3325_vm11, %vm3330_vm5 }
  0x46   : > { %vm2375_vm11 = vmxor %vm3327_vm14, %vm3330_vm5 }
  0x48   : > { %1045 = vperm.xlu1 %1857, %v1015_v16   ;;  %1048 = vperm.xlu0 %1856, %v1016_v17   ;;  %v2401_v16 = vadd.s32 %v2231_v33, %v579_v7  ;;  %v580_v17 = vadd.s32 96, %v2228_v29 }
  0x49   : > { %1768 = vmatpush3.bf16.xpose.msra.mxu0 %v1860_v5  ;;  %1805 = vmatpush3.bf16.xpose.msra.mxu1 %v1860_v5  ;;  %v2346_v5 = vadd.s32 %v2231_v33, %v577_v59  ;;  %v3404_v59 = vmov 0 }
  0x4a   : > { %1769 = vmatprep.subr.bf16.mxu0 %v1861_v8  ;;  %1798 = vmatprep.subr.bf16.mxu1 %v1861_v8  ;;  %v2456_v30 = vadd.s32 %v2231_v33, %v580_v17 }
  0x4c   : > { %1051 = vperm.xlu1 %1857, %v1017_v18   ;;  %1054 = vperm.xlu0 %1856, %v1018_v19   ;;  %v3344_v18 = vmov 0.0  }
  0x50   : > { %1057 = vperm.xlu1 %1857, %v1019_v21   ;;  %1060 = vperm.xlu0 %1856, %v1020_v22   ;;  %v581_v21 = vadd.s32 104, %v2228_v29  ;;  %v3425_v22 = vmov 0 }
  0x51   : > { %1770 = vmatpush3.bf16.xpose.msra.mxu0 %v1861_v8  ;;  %1806 = vmatpush3.bf16.xpose.msra.mxu1 %v1861_v8 }
  0x52   : > { %1771 = vmatprep.subr.bf16.mxu0 %v1862_v15  ;;  %1799 = vmatprep.subr.bf16.mxu1 %v1862_v15 }
  0x54   : > { %1063 = vperm.xlu1 %1857, %v1021_v23   ;;  %1066 = vperm.xlu0 %1856, %v1022_v24   ;;  %v3428_v24 = vmov 0 }
  0x58   : > { %1069 = vperm.xlu1 %1857, %v1023_v27   ;;  %1072 = vperm.xlu0 %1856, %v1024_v28   ;;  %v3375_v27 = vmov 0 }
  0x59   : > { %1772 = vmatpush3.bf16.xpose.msra.mxu0 %v1862_v15  ;;  %1807 = vmatpush3.bf16.xpose.msra.mxu1 %v1862_v15  ;;  %v2398_v15 = vadd.s32 %v2231_v33, %v578_v6  ;;  %v3413_v6 = vmov 0 }
  0x5a   : > { %1773 = vmatprep.subr.bf16.mxu0 %v1863_v20  ;;  %1800 = vmatprep.subr.bf16.mxu1 %v1863_v20 }
  0x61   : > { %1774 = vmatpush3.bf16.xpose.msra.mxu0 %v1863_v20  ;;  %1808 = vmatpush3.bf16.xpose.msra.mxu1 %v1863_v20 }
  0x62   : > { %1775 = vmatprep.subr.bf16.mxu0 %v1864_v25  ;;  %1801 = vmatprep.subr.bf16.mxu1 %v1864_v25 }
  0x69   : > { %1776 = vmatpush3.bf16.xpose.msra.mxu0 %v1864_v25  ;;  %1809 = vmatpush3.bf16.xpose.msra.mxu1 %v1864_v25 }
  0x6a   : > { %1777 = vmatprep.subr.bf16.mxu0 %v1865_v34  ;;  %1802 = vmatprep.subr.bf16.mxu1 %v1865_v34 }
  0x71   : > { %1778 = vmatpush3.bf16.xpose.msra.mxu0 %v1865_v34  ;;  %1810 = vmatpush3.bf16.xpose.msra.mxu1 %v1865_v34  ;;  %v3381_v34 = vmov 0 }
  0x78   : > { %1780 = vmatmul.mubr.bf16.vlgmr.msra.gmra.mrb[0].mxu0 %v1868_v37  ;;  %1788 = vmatmul.mubr.bf16.vlgmr.msra.gmra.mrb[0].mxu1 %v1869_v38  ;;  %v2473_v37 = vadd.s32 %v2231_v33, %v581_v21 }
  0x79   : > { %1783 = vmatprep.mubr.bf16.mxu0 %v1870_v39  ;;  %1791 = vmatprep.mubr.bf16.mxu1 %v1871_v40 }
  0x80   : > { %1784 = vmatmul.mubr.bf16.gmra.mrb[4].mxu0 %v1872_v41  ;;  %1792 = vmatmul.mubr.bf16.gmra.mrb[4].mxu1 %v1873_v42  ;;  %v3388_v41 = vmov 0  ;;  %v1148_v42 = vld [vmem:[#allocation5 + $0x30] sm:$0xff] }
  0xbb   : > { %v1031_v2 = vpop.permute.xlu1 %1030  ;;  %v1028_v3 = vpop.permute.xlu0 %1027 }
  0xbc   : > { %vm1079_vm15 = vcmp.eq.s32.totalorder %v1031_v2, %v2312_v62  ;;  %vm1078_vm0 = vcmp.eq.s32.totalorder %v1028_v3, %v2312_v62 }
  0xbd   : > { %vm2365_vm3 = vmand %vm1078_vm0, %vm2284_vm6 }
  0xbe   : > { %vm1111_vm2 = vmand %vm1079_vm15, %vm2318_vm10 }
  0xbf   : > { %v1034_v11 = vpop.permute.xlu1 %1033  ;;  %v1037_v12 = vpop.permute.xlu0 %1036  ;;  %vm2383_vm6 = vmand %vm1111_vm2, %vm3329_vm7 }
  0xc0   : > { %v3366_v13 = vsel %vm2383_vm6, 4294967295, %v3365_v13  ;;  %vm2391_vm10 = vmxor %vm3326_vm4, %vm3330_vm5  ;;  %vm1080_vm2 = vcmp.eq.s32.totalorder %v1034_v11, %v2312_v62  ;;  %vm1081_vm0 = vcmp.eq.s32.totalorder %v1037_v12, %v2312_v62  ;;  %v1729_v19 = vsel %vm2383_vm6, 1.0, %v3344_v18 }
  0xc1   : > { %vm2413_vm4 = vmand %vm2365_vm3, %vm3329_vm7  ;;  %1192 = vadd.xlane.f32.xlu0 %v1729_v19  ;;  %vm3383_vm6 = vmmov 1   ;;  %v3422_v19 = vmov 0 }
  0xc2   : > { %vm2420_vm14 = vmand %vm1081_vm0, %vm2298_vm8  ;;  %v1728_v23 = vsel %vm2413_vm4, 1.0, %v3344_v18 }
  0xc3   : > { %vm1112_vm15 = vmand %vm1080_vm2, %vm2357_vm9  ;;  %1190 = vadd.xlane.f32.xlu1 %v1728_v23  ;;  %v1040_v25 = vpop.permute.xlu1 %1039  ;;  %v1043_v26 = vpop.permute.xlu0 %1042  ;;  %vm3377_vm9 = vcmp.eq.s32.totalorder %v2346_v5, %v2234_v35 }
  0xc4   : > { %vm2433_vm3 = vmxor %vm3328_vm1, %vm3330_vm5 }
  0xc5   : > { %vm2439_vm8 = vmand %vm1112_vm15, %vm3329_vm7  ;;  %vm1082_vm15 = vcmp.eq.s32.totalorder %v1040_v25, %v2312_v62  ;;  %vm1083_vm7 = vcmp.eq.s32.totalorder %v1043_v26, %v2312_v62 }
  0xc6   : > { %v3376_v27 = vsel %vm2439_vm8, 4294967295, %v3375_v27  ;;  %vm2447_vm2 = vmxor %vm3377_vm9, %vm3330_vm5  ;;  %v1730_v32 = vsel %vm2439_vm8, 1.0, %v3344_v18  ;;  %vm3380_vm9 = vcmp.lt.s32.totalorder %v2234_v35, 300 }
  0xc7   : > { %vm2468_vm0 = vmand %vm2420_vm14, %vm3380_vm9  ;;  %1194 = vadd.xlane.f32.xlu0 %v1730_v32  ;;  %vm3384_vm14 = vcmp.eq.s32.totalorder %v2398_v15, %v2234_v35  ;;  %v1046_v39 = vpop.permute.xlu1 %1045  ;;  %v1049_v40 = vpop.permute.xlu0 %1048 }
  0xc8   : > { %v3382_v34 = vsel %vm2468_vm0, 4294967295, %v3381_v34  ;;  %vm1114_vm1 = vmand %vm1082_vm15, %vm2328_vm12  ;;  %v1731_v29 = vsel %vm2468_vm0, 1.0, %v3344_v18  ;;  %vm3387_vm12 = vcmp.lt.s32.totalorder %v2234_v35, 300  ;;  %vm1084_vm0 = vcmp.eq.s32.totalorder %v1046_v39, %v2312_v62 }
  0xc9   : > { %vm1115_vm5 = vmand %vm1083_vm7, %vm2339_vm13  ;;  %1196 = vadd.xlane.f32.xlu1 %v1731_v29  ;;  %vm3390_vm7 = vcmp.eq.s32.totalorder %v2401_v16, %v2234_v35 }
  0xca   : > { %vm2486_vm9 = vmxor %vm3384_vm14, %vm3383_vm6  ;;  %vm3337_vm14 = vcmp.eq.s32.totalorder %v2473_v37, %v2234_v35 }
  0xcb   : > { %vm2492_vm15 = vmand %vm1114_vm1, %vm3387_vm12  ;;  %vm1085_vm1 = vcmp.eq.s32.totalorder %v1049_v40, %v2312_v62  ;;  %v1052_v49 = vpop.permute.xlu1 %1051  ;;  %v1055_v52 = vpop.permute.xlu0 %1054 }
  0xcc   : > { %v3389_v41 = vsel %vm2492_vm15, 4294967295, %v3388_v41  ;;  %vm2500_vm13 = vmxor %vm3390_vm7, %vm3383_vm6  ;;  %v1732_v44 = vsel %vm2492_vm15, 1.0, %v3344_v18 }
  0xcd   : > { %vm2516_vm7 = vmand %vm1115_vm5, %vm3387_vm12  ;;  %1198 = vadd.xlane.f32.xlu0 %v1732_v44  ;;  %vm3395_vm5 = vcmp.eq.s32.totalorder %v2456_v30, %v2234_v35 }
  0xce   : > { %v3394_v45 = vsel %vm2516_vm7, 4294967295, %v3393_v45  ;;  %vm1116_vm8 = vmand %vm1084_vm0, %vm2375_vm11  ;;  %v1733_v33 = vsel %vm2516_vm7, 1.0, %v3344_v18  ;;  %vm3398_vm11 = vcmp.lt.s32.totalorder %v2234_v35, 300  ;;  %vm1087_vm7 = vcmp.eq.s32.totalorder %v1055_v52, %v2312_v62 }
  0xcf   : > { %vm1117_vm15 = vmand %vm1085_vm1, %vm2391_vm10  ;;  %1200 = vadd.xlane.f32.xlu1 %v1733_v33  ;;  %v1058_v0 = vpop.permute.xlu1 %1057  ;;  %v1061_v2 = vpop.permute.xlu0 %1060 }
  0xd0   : > { %vm2533_vm12 = vmxor %vm3395_vm5, %vm3383_vm6  ;;  %vm1086_vm5 = vcmp.eq.s32.totalorder %v1052_v49, %v2312_v62 }
  0xd1   : > { %vm2539_vm0 = vmand %vm1116_vm8, %vm3398_vm11 }
  0xd2   : > { %v3400_v54 = vsel %vm2539_vm0, 4294967295, %v3399_v54  ;;  %vm2547_vm10 = vmxor %vm3337_vm14, %vm3383_vm6  ;;  %v1734_v57 = vsel %vm2539_vm0, 1.0, %v3344_v18  ;;  %vm3406_vm0 = vcmp.eq.s32.totalorder %v2507_v43, %v2234_v35 }
  0xd3   : > { %vm3403_vm8 = vmmov %vm3398_vm11  ;;  %1202 = vadd.xlane.f32.xlu0 %v1734_v57  ;;  %v1064_v8 = vpop.permute.xlu1 %1063  ;;  %v1067_v9 = vpop.permute.xlu0 %1066 }
  0xd4   : > { %vm2560_vm11 = vmand %vm1117_vm15, %vm3403_vm8 }
  0xd5   : > { %v3405_v59 = vsel %vm2560_vm11, 4294967295, %v3404_v59  ;;  %vm1118_vm14 = vmand %vm1086_vm5, %vm2433_vm3  ;;  %v1735_v60 = vsel %vm2560_vm11, 1.0, %v3344_v18 }
  0xd6   : > { %vm1119_vm1 = vmand %vm1087_vm7, %vm2447_vm2  ;;  %1204 = vadd.xlane.f32.xlu1 %v1735_v60  ;;  %vm1089_vm2 = vcmp.eq.s32.totalorder %v1061_v2, %v2312_v62 }
  0xd7   : > { %vm2575_vm15 = vmxor %vm3406_vm0, %vm3383_vm6  ;;  %v1070_v17 = vpop.permute.xlu1 %1069  ;;  %v1073_v26 = vpop.permute.xlu0 %1072 }
  0xd8   : > { %vm3409_vm3 = vmmov %vm3403_vm8  ;;  %vm1088_vm8 = vcmp.eq.s32.totalorder %v1058_v0, %v2312_v62 }
  0xd9   : > { %vm2581_vm5 = vmand %vm1118_vm14, %vm3409_vm3 }
  0xda   : > { %v1736_v4 = vsel %vm2581_vm5, 1.0, %v3344_v18  ;;  %vm3412_vm7 = vmmov %vm3409_vm3 }
  0xdb   : > { %vm2592_vm0 = vmand %vm1119_vm1, %vm3412_vm7  ;;  %1206 = vadd.xlane.f32.xlu0 %v1736_v4 }
  0xdc   : > { %v3414_v6 = vsel %vm2592_vm0, 4294967295, %v3413_v6  ;;  %vm1120_vm14 = vmand %vm1088_vm8, %vm2486_vm9  ;;  %v1737_v7 = vsel %vm2592_vm0, 1.0, %v3344_v18  ;;  %vm1091_vm9 = vcmp.eq.s32.totalorder %v1067_v9, %v2312_v62 }
  0xdd   : > { %vm1121_vm3 = vmand %vm1089_vm2, %vm2500_vm13  ;;  %1208 = vadd.xlane.f32.xlu1 %v1737_v7 }
  0xde   : > { %vm3415_vm11 = vmmov %vm3412_vm7  ;;  %vm1090_vm7 = vcmp.eq.s32.totalorder %v1064_v8, %v2312_v62 }
  0xdf   : > { %vm2605_vm1 = vmand %vm1120_vm14, %vm3415_vm11 }
  0xe0   : > { %v1738_v11 = vsel %vm2605_vm1, 1.0, %v3344_v18  ;;  %vm3418_vm8 = vmmov %vm3415_vm11 }
  0xe1   : > { %vm2616_vm13 = vmand %vm1121_vm3, %vm3418_vm8  ;;  %1210 = vadd.xlane.f32.xlu0 %v1738_v11  ;;  %vm1092_vm3 = vcmp.eq.s32.totalorder %v1070_v17, %v2312_v62  ;;  %v1143_v11 = vld [vmem:[#allocation5 + $0x8] sm:$0xff] }
  0xe2   : > { %vm1122_vm11 = vmand %vm1090_vm7, %vm2533_vm12  ;;  %v1739_v14 = vsel %vm2616_vm13, 1.0, %v3344_v18 }
  0xe3   : > { %vm1123_vm2 = vmand %vm1091_vm9, %vm2547_vm10  ;;  %1212 = vadd.xlane.f32.xlu1 %v1739_v14  ;;  %v1142_v14 = vld [vmem:[#allocation5] sm:$0xff] }
  0xe4   : > { %vm3421_vm14 = vmmov %vm3418_vm8 }
  0xe5   : > { %vm2629_vm0 = vmand %vm1122_vm11, %vm3421_vm14  ;;  %vm3430_vm11 = vcmp.eq.s32.totalorder %v2237_v36, %v2234_v35 }
  0xe6   : > { %v3423_v19 = vsel %vm2629_vm0, 4294967295, %v3422_v19  ;;  %v1740_v21 = vsel %vm2629_vm0, 1.0, %v3344_v18  ;;  %vm3424_vm12 = vmmov %vm3418_vm8 }
  0xe7   : > { %vm2639_vm7 = vmand %vm1123_vm2, %vm3424_vm12  ;;  %1214 = vadd.xlane.f32.xlu0 %v1740_v21 }
  0xe8   : > { %v3426_v22 = vsel %vm2639_vm7, 4294967295, %v3425_v22  ;;  %vm1124_vm10 = vmand %vm1092_vm3, %vm2575_vm15  ;;  %v1741_v23 = vsel %vm2639_vm7, 1.0, %v3344_v18  ;;  %vm1093_vm15 = vcmp.eq.s32.totalorder %v1073_v26, %v2312_v62 }
  0xe9   : > { %1216 = vadd.xlane.f32.xlu1 %v1741_v23  ;;  %vm3427_vm9 = vmmov %vm3418_vm8 }
  0xea   : > { %vm2650_vm8 = vmand %vm1124_vm10, %vm3427_vm9 }
  0xeb   : > { %v3429_v24 = vsel %vm2650_vm8, 4294967295, %v3428_v24  ;;  %v1742_v25 = vsel %vm2650_vm8, 1.0, %v3344_v18  ;;  %vm1109_vm2 = vmxor %vm3430_vm11, %vm3383_vm6  ;;  %vm3437_vm8 = vcmp.eq.s32.totalorder %v2275_v55, %v2234_v35  ;;  %v2988_v18 = vld [vmem:[#allocation2 + $0x60] sm:$0xff] }
  0xec   : > { %1218 = vadd.xlane.f32.xlu0 %v1742_v25  ;;  %vm1125_vm14 = vmand %vm1093_vm15, %vm1109_vm2  ;;  %vm3438_vm15 = vcmp.eq.s32.totalorder %v2398_v15, %v2234_v35  ;;  %v1144_v25 = vld [vmem:[#allocation5 + $0x10] sm:$0xff] }
  0xed   : > { %vm3431_vm3 = vmmov %vm3427_vm9 }
  0xee   : > { %vm2664_vm12 = vmand %vm1125_vm14, %vm3431_vm3 }
  0xef   : > { %vm3434_vm10 = vmmov %vm3431_vm3  ;;  %vm3440_vm3 = vcmp.eq.s32.totalorder %v2333_v1, %v2234_v35 }
  0xf0   : > { %vm2671_vm9 = vmxor %vm3434_vm10, %vm3383_vm6  ;;  %vm3439_vm6 = vcmp.eq.s32.totalorder %v2252_v46, %v2234_v35 }
  0xf1   : > { %vm626_vm11 = vmor %vm3437_vm8, %vm2671_vm9  ;;  %vm3441_vm8 = vcmp.eq.s32.totalorder %v2401_v16, %v2234_v35 }
  0xf2   : > { %vm634_vm2 = vmor %vm3438_vm15, %vm2671_vm9  ;;  %vm3444_vm15 = vcmp.eq.s32.totalorder %v2256_v48, %v2234_v35 }
  0xf3   : > { %vm624_vm14 = vmor %vm3439_vm6, %vm2671_vm9 }
  0xf4   : > { %vm632_vm10 = vmor %vm3440_vm3, %vm2671_vm9  ;;  %vm3447_vm3 = vcmp.eq.s32.totalorder %v2260_v50, %v2234_v35 }
  0xf5   : > { %vm2700_vm0 = vmor %vm3441_vm8, %vm2671_vm9 }
  0xf6   : > { %vm2709_vm6 = vmor %vm3444_vm15, %vm2671_vm9  ;;  %vm3450_vm15 = vcmp.eq.s32.totalorder %v2346_v5, %v2234_v35 }
  0xf7   : > { %vm2718_vm8 = vmor %vm3447_vm3, %vm2671_vm9  ;;  %vm3456_vm3 = vcmp.eq.s32.totalorder %v2456_v30, %v2234_v35 }
  0xf8   : > { %vm633_vm7 = vmor %vm3450_vm15, %vm2671_vm9 }
  0xf9   : > { %vm636_vm15 = vmor %vm3456_vm3, %vm2671_vm9 }
 0x14b   : > { %v1781_v62 = vpop.f32.mrb[0].mxu0  ;;  %v1789_v1 = vpop.f32.mrb[0].mxu1 }
 0x14c   : > { %v2722_v16 = vsel %vm626_vm11, -inf, %v1781_v62  ;;  %v2724_v32 = vsel %vm634_vm2, -inf, %v1789_v1  ;;  %v503_v48 = vpop.f32.mrb[1].mxu0  ;;  %v535_v29 = vpop.f32.mrb[1].mxu1  ;;  %vm3451_vm11 = vcmp.eq.s32.totalorder %v2291_v58, %v2234_v35  ;;  %v1146_v1 = vld [vmem:[#allocation5 + $0x20] sm:$0xff] }
 0x14d   : > { %v2731_v38 = vsel %vm624_vm14, -inf, %v503_v48  ;;  %v2733_v39 = vsel %vm632_vm10, -inf, %v535_v29  ;;  %692 = vmax.xlane.f32.xlu0 %v2724_v32  ;;  %v1790_v50 = vpop.f32.mrb[2].mxu1  ;;  %676 = vmax.xlane.f32.xlu1 %v2722_v16  ;;  %v1782_v40 = vpop.f32.mrb[2].mxu0  ;;  %vm2742_vm2 = vmor %vm3451_vm11, %vm2671_vm9  ;;  %vm3454_vm14 = vcmp.eq.s32.totalorder %v2507_v43, %v2234_v35  ;;  %vm3460_vm11 = vcmp.eq.s32.totalorder %v2305_v61, %v2234_v35  ;;  %v1147_v48 = vld [vmem:[#allocation5 + $0x28] sm:$0xff] }
 0x14e   : > { %v2748_v5 = vsel %vm2700_vm0, -inf, %v1790_v50  ;;  %v2752_v44 = vsel %vm2709_vm6, -inf, %v1782_v40  ;;  %v506_v33 = vpop.f32.mrb[3].mxu0  ;;  %v538_v47 = vpop.f32.mrb[3].mxu1  ;;  %vm638_vm10 = vmor %vm3454_vm14, %vm2671_vm9  ;;  %vm3455_vm0 = vcmp.eq.s32.totalorder %v2263_v51, %v2234_v35  ;;  %v1278_v20 = vsel %vm2581_vm5, %v2733_v39, 0.0 }
 0x14f   : > { %v2761_v58 = vsel %vm2718_vm8, -inf, %v506_v33  ;;  %v2763_v49 = vsel %vm633_vm7, -inf, %v538_v47  ;;  %vm628_vm6 = vmor %vm3455_vm0, %vm2671_vm9  ;;  %vm3457_vm7 = vcmp.eq.s32.totalorder %v2237_v36, %v2234_v35  ;;  %vm3463_vm0 = vcmp.eq.s32.totalorder %v2269_v53, %v2234_v35  ;;  %v1193_v17 = vpop.xlane.xlu0 %1192  ;;  %v1149_v47 = vld [vmem:[#allocation5 + $0x38] sm:$0xff] }
 0x150   : > { %vm2782_vm8 = vmor %vm3457_vm7, %vm2671_vm9  ;;  %vm3466_vm7 = vcmp.eq.s32.totalorder %v2473_v37, %v2234_v35  ;;  %v1223_v21 = vadd.f32 %v1193_v17, %v1143_v11  ;;  %v1191_v23 = vpop.xlane.xlu1 %1190  ;;  %v1153_v11 = vld [vmem:[#allocation5 + $0x58] sm:$0xff]  ;;  %vm3477_vm5 = vnez %v3394_v45 }
 0x151   : > { %672 = vmax.xlane.f32.xlu0 %v2731_v38  ;;  %678 = vmax.xlane.f32.xlu1 %v2752_v44  ;;  %vm2791_vm14 = vmor %vm3460_vm11, %vm2671_vm9  ;;  %v1222_v26 = vadd.f32 %v1191_v23, %v1142_v14  ;;  %v1154_v23 = vld [vmem:[#allocation5 + $0x60] sm:$0xff] }
 0x152   : > { %vm2800_vm3 = vmor %vm3463_vm0, %vm2671_vm9  ;;  %vm3481_vm0 = vnez %v3423_v19 }
 0x153   : > { %v1785_v30 = vpop.f32.mrb[4].mxu0  ;;  %v1793_v52 = vpop.f32.mrb[4].mxu1  ;;  %vm637_vm11 = vmor %vm3466_vm7, %vm2671_vm9  ;;  %vm976_vm9 = vcmask 7168  }
 0x154   : > { %v2806_v56 = vsel %vm2742_vm2, -inf, %v1785_v30  ;;  %v2808_v61 = vsel %vm638_vm10, -inf, %v1793_v52  ;;  %v519_v57 = vpop.f32.mrb[5].mxu0  ;;  %v551_v60 = vpop.f32.mrb[5].mxu1  ;;  %1239 = vst.msk [vmem:[#allocation5 + $0x8] sm:$0xff] %vm976_vm9, %v1223_v21  ;;  %1238 = vst.msk [vmem:[#allocation5] sm:$0xff] %vm976_vm9, %v1222_v26  ;;  %vm3471_vm2 = vnez %v3376_v27  ;;  %vm3472_vm10 = vnez %v3389_v41 }
 0x155   : > { %v2815_v63 = vsel %vm628_vm6, -inf, %v519_v57  ;;  %v2817_v53 = vsel %vm636_vm15, -inf, %v551_v60  ;;  %v1794_v0 = vpop.f32.mrb[6].mxu1  ;;  %688 = vmax.xlane.f32.xlu0 %v2733_v39  ;;  %694 = vmax.xlane.f32.xlu1 %v2748_v5  ;;  %v1786_v2 = vpop.f32.mrb[6].mxu0  ;;  %v1150_v52 = vld [vmem:[#allocation5 + $0x40] sm:$0xff]  ;;  %v1151_v57 = vld [vmem:[#allocation5 + $0x48] sm:$0xff]  ;;  %vm3473_vm6 = vnez %v3400_v54  ;;  %vm3476_vm15 = vnez %v3382_v34 }
 0x156   : > { %v2823_v4 = vsel %vm2782_vm8, -inf, %v1794_v0  ;;  %v2827_v7 = vsel %vm2791_vm14, -inf, %v1786_v2  ;;  %v522_v35 = vpop.f32.mrb[7].mxu0  ;;  %v554_v37 = vpop.f32.mrb[7].mxu1  ;;  %v1155_v26 = vld [vmem:[#allocation5 + $0x68] sm:$0xff]  ;;  %v1280_v27 = vsel %vm2605_vm1, %v2724_v32, 0.0  ;;  %vm3478_vm1 = vnez %v3405_v59 }
 0x157   : > { %v2831_v8 = vsel %vm2800_vm3, -inf, %v522_v35  ;;  %v2833_v9 = vsel %vm637_vm11, -inf, %v554_v37  ;;  %v1195_v55 = vpop.xlane.xlu0 %1194  ;;  %v1197_v62 = vpop.xlane.xlu1 %1196  ;;  %v1152_v35 = vld [vmem:[#allocation5 + $0x50] sm:$0xff]  ;;  %v1273_v3 = vsel %vm3476_vm15, %v2752_v44, 0.0  ;;  %vm3479_vm8 = vnez %v3414_v6 }
 0x158   : > { %v1224_v46 = vadd.f32 %v1195_v55, %v1144_v25  ;;  %v1225_v15 = vadd.f32 %v1197_v62, %v1145_v31  ;;  %v1156_v62 = vld [vmem:[#allocation5 + $0x70] sm:$0xff]  ;;  %v1275_v10 = vsel %vm3477_vm5, %v2831_v8, 0.0  ;;  %v1281_v34 = vsel %vm2616_vm13, %v2748_v5, 0.0 }
 0x159   : > { %690 = vmax.xlane.f32.xlu1 %v2763_v49  ;;  %674 = vmax.xlane.f32.xlu0 %v2761_v58  ;;  %vm3480_vm14 = vnez %v3426_v22  ;;  %v1282_v59 = vsel %vm3481_vm0, %v2817_v53, 0.0  ;;  %vm3482_vm13 = vnez %v3429_v24 }
 0x15a   : > { %1240 = vst.msk [vmem:[#allocation5 + $0x10] sm:$0xff] %vm976_vm9, %v1224_v46  ;;  %1241 = vst.msk [vmem:[#allocation5 + $0x18] sm:$0xff] %vm976_vm9, %v1225_v15  ;;  %v1283_v45 = vsel %vm3480_vm14, %v2833_v9, 0.0 }
 0x15b   : > { %v1199_v29 = vpop.xlane.xlu0 %1198 }
 0x15c   : > { %v1226_v50 = vadd.f32 %v1199_v29, %v1146_v1  ;;  %v1201_v40 = vpop.xlane.xlu1 %1200  ;;  %v2860_v29 = vld [vmem:[#allocation2 + $0x50] sm:$0xff] }
 0x15d   : > { %684 = vmax.xlane.f32.xlu0 %v2806_v56  ;;  %686 = vmax.xlane.f32.xlu1 %v2827_v7  ;;  %v1227_v33 = vadd.f32 %v1201_v40, %v1147_v48 }
 0x15e   : > { %1242 = vst.msk [vmem:[#allocation5 + $0x20] sm:$0xff] %vm976_vm9, %v1226_v50  ;;  %v2862_v50 = vld [vmem:[#allocation2 + $0x10] sm:$0xff] }
 0x15f   : > { %1243 = vst.msk [vmem:[#allocation5 + $0x28] sm:$0xff] %vm976_vm9, %v1227_v33 }
 0x160   : > { %v1203_v43 = vpop.xlane.xlu0 %1202 }
 0x161   : > { %700 = vmax.xlane.f32.xlu0 %v2808_v61  ;;  %702 = vmax.xlane.f32.xlu1 %v2823_v4  ;;  %v1228_v51 = vadd.f32 %v1203_v43, %v1148_v42  ;;  %v2870_v43 = vld [vmem:[#allocation2] sm:$0xff] }
 0x163   : > { %v1205_v30 = vpop.xlane.xlu1 %1204  ;;  %1244 = vst.msk [vmem:[#allocation5 + $0x30] sm:$0xff] %vm976_vm9, %v1228_v51  ;;  %v2872_v51 = vld [vmem:[#allocation2 + $0x18] sm:$0xff] }
 0x164   : > { %v1229_v36 = vadd.f32 %v1205_v30, %v1149_v47  ;;  %v2970_v30 = vld [vmem:[#allocation2 + $0x28] sm:$0xff] }
 0x165   : > { %680 = vmax.xlane.f32.xlu0 %v2815_v63  ;;  %682 = vmax.xlane.f32.xlu1 %v2831_v8 }
 0x166   : > { %1245 = vst.msk [vmem:[#allocation5 + $0x38] sm:$0xff] %vm976_vm9, %v1229_v36 }
 0x168   : > { %v1207_v60 = vpop.xlane.xlu0 %1206 }
 0x169   : > { %696 = vmax.xlane.f32.xlu0 %v2817_v53  ;;  %698 = vmax.xlane.f32.xlu1 %v2833_v9  ;;  %v1230_v0 = vadd.f32 %v1207_v60, %v1150_v52 }
 0x16a   : > { %v1209_v2 = vpop.xlane.xlu1 %1208 }
 0x16b   : > { %v1231_v37 = vadd.f32 %v1209_v2, %v1151_v57  ;;  %1246 = vst.msk [vmem:[#allocation5 + $0x40] sm:$0xff] %vm976_vm9, %v1230_v0  ;;  %v2889_v2 = vld [vmem:[#allocation2 + $0x40] sm:$0xff] }
 0x16d   : > { %1247 = vst.msk [vmem:[#allocation5 + $0x48] sm:$0xff] %vm976_vm9, %v1231_v37  ;;  %v1276_v37 = vsel %vm3473_vm6, %v2806_v56, 0.0 }
 0x16e   : > { %v1211_v14 = vpop.xlane.xlu0 %1210 }
 0x16f   : > { %v1232_v17 = vadd.f32 %v1211_v14, %v1152_v35  ;;  %v2891_v35 = vld [vmem:[#allocation2 + $0x58] sm:$0xff] }
 0x170   : > { %v1213_v21 = vpop.xlane.xlu1 %1212 }
 0x171   : > { %v1233_v25 = vadd.f32 %v1213_v21, %v1153_v11  ;;  %1248 = vst.msk [vmem:[#allocation5 + $0x50] sm:$0xff] %vm976_vm9, %v1232_v17 }
 0x173   : > { %1249 = vst.msk [vmem:[#allocation5 + $0x58] sm:$0xff] %vm976_vm9, %v1233_v25  ;;  %v2909_v25 = vld [vmem:[#allocation2 + $0x48] sm:$0xff] }
 0x174   : > { %v1215_v31 = vpop.xlane.xlu0 %1214 }
 0x175   : > { %v1234_v55 = vadd.f32 %v1215_v31, %v1154_v23 }
 0x176   : > { %v1217_v46 = vpop.xlane.xlu1 %1216 }
 0x177   : > { %v1235_v1 = vadd.f32 %v1217_v46, %v1155_v26  ;;  %1250 = vst.msk [vmem:[#allocation5 + $0x60] sm:$0xff] %vm976_vm9, %v1234_v55  ;;  %v2911_v26 = vld [vmem:[#allocation2 + $0x8] sm:$0xff]  ;;  %v2968_v55 = vld [vmem:[#allocation2 + $0x20] sm:$0xff] }
 0x179   : > { %v1219_v15 = vpop.xlane.xlu0 %1218  ;;  %1251 = vst.msk [vmem:[#allocation5 + $0x68] sm:$0xff] %vm976_vm9, %v1235_v1 }
 0x17a   : > { %v1236_v48 = vadd.f32 %v1219_v15, %v1156_v62 }
 0x17c   : > { %1252 = vst.msk [vmem:[#allocation5 + $0x70] sm:$0xff] %vm976_vm9, %v1236_v48  ;;  %v2929_v48 = vld [vmem:[#allocation2 + $0x30] sm:$0xff] }
 0x1da   : > { %v693_v40 = vpop.xlane.xlu0 %692  ;;  %v677_v42 = vpop.xlane.xlu1 %676 }
 0x1db   : > { %v2865_v33 = vmax.f32 %v2860_v29, %v693_v40  ;;  %v2868_v47 = vmax.f32 %v2862_v50, %v677_v42  ;;  %v2931_v40 = vld [vmem:[#allocation2 + $0x38] sm:$0xff] }
 0x1dc   : > { %3467 = vst [vmem:[#allocation6_spill] sm:$0xff] %v2931_v40  ;;  %v2951_v42 = vld [vmem:[#allocation2 + $0x78] sm:$0xff] }
 0x1dd   : > { %1003 = vst.msk [vmem:[#allocation2 + $0x50] sm:$0xff] %vm976_vm9, %v2865_v33  ;;  %995 = vst.msk [vmem:[#allocation2 + $0x10] sm:$0xff] %vm976_vm9, %v2868_v47  ;;  %780 = vperm.xlu1 %1857, %v2868_v47  }
 0x1de   : > { %v673_v36 = vpop.xlane.xlu0 %672  ;;  %v679_v57 = vpop.xlane.xlu1 %678  ;;  %3469 = vst [vmem:[#allocation8_spill] sm:$0xff] %v2951_v42 }
 0x1df   : > { %v2884_v60 = vmax.f32 %v2870_v43, %v673_v36  ;;  %v2887_v0 = vmax.f32 %v2872_v51, %v679_v57 }
 0x1e1   : > { %993 = vst.msk [vmem:[#allocation2] sm:$0xff] %vm976_vm9, %v2884_v60  ;;  %996 = vst.msk [vmem:[#allocation2 + $0x18] sm:$0xff] %vm976_vm9, %v2887_v0  ;;  %770 = vperm.xlu0 %1856, %v2884_v60   ;;  %820 = vperm.xlu1 %1857, %v2865_v33  }
 0x1e2   : > { %v689_v14 = vpop.xlane.xlu0 %688  ;;  %v695_v17 = vpop.xlane.xlu1 %694 }
 0x1e3   : > { %v2904_v21 = vmax.f32 %v2889_v2, %v689_v14  ;;  %v2907_v23 = vmax.f32 %v2891_v35, %v695_v17 }
 0x1e5   : > { %1001 = vst.msk [vmem:[#allocation2 + $0x40] sm:$0xff] %vm976_vm9, %v2904_v21  ;;  %1004 = vst.msk [vmem:[#allocation2 + $0x58] sm:$0xff] %vm976_vm9, %v2907_v23  ;;  %825 = vperm.xlu0 %1856, %v2907_v23   ;;  %810 = vperm.xlu1 %1857, %v2904_v21  }
 0x1e6   : > { %v691_v46 = vpop.xlane.xlu1 %690  ;;  %v675_v62 = vpop.xlane.xlu0 %674 }
 0x1e7   : > { %v2924_v1 = vmax.f32 %v2909_v25, %v691_v46  ;;  %v2927_v15 = vmax.f32 %v2911_v26, %v675_v62  ;;  %v2949_v62 = vld [vmem:[#allocation2 + $0x70] sm:$0xff] }
 0x1e8   : > { %3468 = vst [vmem:[#allocation7_spill] sm:$0xff] %v2949_v62 }
 0x1e9   : > { %1002 = vst.msk [vmem:[#allocation2 + $0x48] sm:$0xff] %vm976_vm9, %v2924_v1  ;;  %994 = vst.msk [vmem:[#allocation2 + $0x8] sm:$0xff] %vm976_vm9, %v2927_v15  ;;  %815 = vperm.xlu0 %1856, %v2924_v1   ;;  %785 = vperm.xlu1 %1857, %v2887_v0  }
 0x1ea   : > { %v685_v57 = vpop.xlane.xlu0 %684  ;;  %v687_v14 = vpop.xlane.xlu1 %686 }
 0x1eb   : > { %v2944_v17 = vmax.f32 %v2929_v48, %v685_v57  ;;  %v2947_v46 = vmax.f32 %v2931_v40, %v687_v14  ;;  %v2990_v40 = vld [vmem:[#allocation2 + $0x68] sm:$0xff] }
 0x1ed   : > { %999 = vst.msk [vmem:[#allocation2 + $0x30] sm:$0xff] %vm976_vm9, %v2944_v17  ;;  %1000 = vst.msk [vmem:[#allocation2 + $0x38] sm:$0xff] %vm976_vm9, %v2947_v46  ;;  %775 = vperm.xlu1 %1857, %v2927_v15  }
 0x1ee   : > { %v701_v57 = vpop.xlane.xlu0 %700  ;;  %v703_v14 = vpop.xlane.xlu1 %702 }
 0x1ef   : > { %v2963_v11 = vmax.f32 %v2949_v62, %v701_v57  ;;  %v2966_v31 = vmax.f32 %v2951_v42, %v703_v14 }
 0x1f1   : > { %3470 = vst [vmem:[#allocation9_spill] sm:$0xff] %v2966_v31  ;;  %1007 = vst.msk [vmem:[#allocation2 + $0x70] sm:$0xff] %vm976_vm9, %v2963_v11  ;;  %845 = vperm.xlu0 %1856, %v2966_v31   ;;  %800 = vperm.xlu1 %1857, %v2944_v17  }
 0x1f2   : > { %1008 = vst.msk [vmem:[#allocation2 + $0x78] sm:$0xff] %vm976_vm9, %v2966_v31  ;;  %v681_v57 = vpop.xlane.xlu0 %680  ;;  %v683_v14 = vpop.xlane.xlu1 %682  ;;  %v1274_v31 = vsel %vm3472_vm10, %v2815_v63, 0.0 }
 0x1f3   : > { %v2983_v52 = vmax.f32 %v2968_v55, %v681_v57  ;;  %v2986_v36 = vmax.f32 %v2970_v30, %v683_v14 }
 0x1f5   : > { %997 = vst.msk [vmem:[#allocation2 + $0x20] sm:$0xff] %vm976_vm9, %v2983_v52  ;;  %998 = vst.msk [vmem:[#allocation2 + $0x28] sm:$0xff] %vm976_vm9, %v2986_v36  ;;  %840 = vperm.xlu1 %1857, %v2963_v11  }
 0x1f6   : > { %v697_v57 = vpop.xlane.xlu0 %696  ;;  %v699_v14 = vpop.xlane.xlu1 %698 }
 0x1f7   : > { %v3002_v42 = vmax.f32 %v2988_v18, %v697_v57  ;;  %v3005_v62 = vmax.f32 %v2990_v40, %v699_v14  ;;  %v1270_v57 = vsel %vm2413_vm4, %v2731_v38, 0.0  ;;  %v1272_v14 = vsel %vm3471_vm2, %v2722_v16, 0.0 }
 0x1f8   : > { %vm3475_vm4 = vnez %v3366_v13  ;;  %v1279_v13 = vsel %vm3479_vm8, %v2763_v49, 0.0 }
 0x1f9   : > { %1005 = vst.msk [vmem:[#allocation2 + $0x60] sm:$0xff] %vm976_vm9, %v3002_v42  ;;  %1006 = vst.msk [vmem:[#allocation2 + $0x68] sm:$0xff] %vm976_vm9, %v3005_v62  ;;  %790 = vperm.xlu1 %1857, %v2983_v52   ;;  %v1271_v54 = vsel %vm3475_vm4, %v2761_v58, 0.0 }
 0x1fd   : > { %830 = vperm.xlu1 %1857, %v3002_v42  }
 0x201   : > { %805 = vperm.xlu1 %1857, %v2947_v46  }
 0x205   : > { %795 = vperm.xlu1 %1857, %v2986_v36  }
 0x210   : > { %1286 = vadd.xlane.f32.xlu0 %v1270_v57  ;;  %v3474_v57 = vmov 0.0  }
 0x211   : > { %v1743_v41 = vsel %vm2664_vm12, 1.0, %v3474_v57 }
 0x214   : > { %1290 = vadd.xlane.f32.xlu0 %v1272_v14 }
 0x218   : > { %1294 = vadd.xlane.f32.xlu0 %v1274_v31 }
 0x21c   : > { %1298 = vadd.xlane.f32.xlu0 %v1276_v37  ;;  %v1277_v37 = vsel %vm3478_vm1, %v2827_v7, 0.0 }
 0x220   : > { %1302 = vadd.xlane.f32.xlu0 %v1278_v20 }
 0x224   : > { %1306 = vadd.xlane.f32.xlu0 %v1280_v27 }
 0x229   : > { %1220 = vadd.xlane.f32.xlu1 %v1743_v41 }
 0x22d   : > { %1288 = vadd.xlane.f32.xlu1 %v1271_v54 }
 0x231   : > { %1292 = vadd.xlane.f32.xlu1 %v1273_v3 }
 0x235   : > { %1296 = vadd.xlane.f32.xlu1 %v1275_v10 }
 0x239   : > { %1300 = vadd.xlane.f32.xlu1 %v1277_v37 }
 0x23a   : > { %835 = vperm.xlu0 %1856, %v3005_v62  }
 0x23d   : > { %1304 = vadd.xlane.f32.xlu1 %v1279_v13 }
 0x241   : > { %1308 = vadd.xlane.f32.xlu1 %v1281_v34 }
 0x245   : > { %1312 = vadd.xlane.f32.xlu1 %v1283_v45 }
 0x259   : > { %1310 = vadd.xlane.f32.xlu0 %v1282_v59 }
 0x25c   : > { %v781_v31 = vpop.permute.xlu1 %780 }
 0x25d   : > { %v850_v6 = vsub.f32 %v2722_v16, %v781_v31 }
 0x25f   : > { %v868_v14 = vmul.f32 1.442695, %v850_v6 }
 0x260   : > { %v771_v20 = vpop.permute.xlu0 %770  ;;  %v821_v27 = vpop.permute.xlu1 %820 }
 0x261   : > { %1874 = vpow2.f32 %v868_v14  ;;  %v848_v12 = vsub.f32 %v2731_v38, %v771_v20  ;;  %v858_v57 = vsub.f32 %v2724_v32, %v821_v27 }
 0x263   : > { %v864_v41 = vmul.f32 1.442695, %v848_v12  ;;  %v884_v22 = vmul.f32 1.442695, %v858_v57 }
 0x264   : > { %v826_v54 = vpop.permute.xlu0 %825  ;;  %v811_v3 = vpop.permute.xlu1 %810 }
 0x265   : > { %1876 = vpow2.f32 %v864_v41  ;;  %v856_v19 = vsub.f32 %v2733_v39, %v811_v3  ;;  %v859_v13 = vsub.f32 %v2748_v5, %v826_v54 }
 0x266   : > { %1878 = vpow2.f32 %v884_v22 }
 0x267   : > { %v880_v10 = vmul.f32 1.442695, %v856_v19  ;;  %v886_v6 = vmul.f32 1.442695, %v859_v13 }
 0x268   : > { %v786_v37 = vpop.permute.xlu1 %785  ;;  %v816_v34 = vpop.permute.xlu0 %815 }
 0x269   : > { %v851_v16 = vsub.f32 %v2752_v44, %v786_v37  ;;  %1880 = vpow2.f32 %v880_v10  ;;  %v857_v59 = vsub.f32 %v2763_v49, %v816_v34 }
 0x26b   : > { %v1875_v45 = vpop.eup %1874  ;;  %v870_v38 = vmul.f32 1.442695, %v851_v16  ;;  %v882_v44 = vmul.f32 1.442695, %v857_v59 }
 0x26c   : > { %932 = vadd.xlane.f32.xlu0 %v1875_v45  ;;  %v776_v32 = vpop.permute.xlu1 %775 }
 0x26d   : > { %v849_v31 = vsub.f32 %v2761_v58, %v776_v32  ;;  %1882 = vpow2.f32 %v870_v38 }
 0x26f   : > { %v1877_v39 = vpop.eup %1876  ;;  %v866_v14 = vmul.f32 1.442695, %v849_v31 }
 0x270   : > { %v1879_v20 = vpop.eup %1878  ;;  %v801_v27 = vpop.permute.xlu1 %800  ;;  %928 = vadd.xlane.f32.xlu1 %v1877_v39 }
 0x271   : > { %1884 = vpow2.f32 %v866_v14  ;;  %948 = vadd.xlane.f32.xlu0 %v1879_v20  ;;  %v854_v5 = vsub.f32 %v2806_v56, %v801_v27  ;;  %v846_v13 = vpop.permute.xlu0 %845 }
 0x272   : > { %1886 = vpow2.f32 %v886_v6  ;;  %v863_v59 = vsub.f32 %v2823_v4, %v846_v13 }
 0x273   : > { %v876_v12 = vmul.f32 1.442695, %v854_v5  ;;  %v1881_v57 = vpop.eup %1880  ;;  %1888 = vpow2.f32 %v882_v44 }
 0x274   : > { %v841_v41 = vpop.permute.xlu1 %840  ;;  %v894_v14 = vmul.f32 1.442695, %v863_v59 }
 0x275   : > { %944 = vadd.xlane.f32.xlu0 %v1881_v57  ;;  %v862_v58 = vsub.f32 %v2808_v61, %v841_v41  ;;  %1890 = vpow2.f32 %v876_v12  ;;  %v1254_v41 = vld [vmem:[#allocation4] sm:$0xff] }
 0x277   : > { %v892_v49 = vmul.f32 1.442695, %v862_v58  ;;  %v1883_v22 = vpop.eup %1882 }
 0x278   : > { %v791_v54 = vpop.permute.xlu1 %790  ;;  %934 = vadd.xlane.f32.xlu1 %v1883_v22 }
 0x279   : > { %1892 = vpow2.f32 %v892_v49  ;;  %v852_v3 = vsub.f32 %v2815_v63, %v791_v54  ;;  %v1256_v49 = vld [vmem:[#allocation4 + $0x10] sm:$0xff] }
 0x27b   : > { %v1885_v19 = vpop.eup %1884  ;;  %v872_v10 = vmul.f32 1.442695, %v852_v3  ;;  %v1258_v3 = vld [vmem:[#allocation4 + $0x20] sm:$0xff] }
 0x27c   : > { %v1887_v37 = vpop.eup %1886  ;;  %930 = vadd.xlane.f32.xlu0 %v1885_v19  ;;  %v831_v56 = vpop.permute.xlu1 %830 }
 0x27d   : > { %1894 = vpow2.f32 %v872_v10  ;;  %v860_v16 = vsub.f32 %v2817_v53, %v831_v56  ;;  %950 = vadd.xlane.f32.xlu1 %v1887_v37  ;;  %v1889_v34 = vpop.eup %1888  ;;  %v1262_v56 = vld [vmem:[#allocation4 + $0x40] sm:$0xff] }
 0x27f   : > { %v888_v45 = vmul.f32 1.442695, %v860_v16  ;;  %v1891_v38 = vpop.eup %1890 }
 0x280   : > { %v806_v32 = vpop.permute.xlu1 %805  ;;  %940 = vadd.xlane.f32.xlu0 %v1891_v38 }
 0x281   : > { %1896 = vpow2.f32 %v888_v45  ;;  %v855_v63 = vsub.f32 %v2827_v7, %v806_v32  ;;  %946 = vadd.xlane.f32.xlu1 %v1889_v34  ;;  %v1284_v7 = vsel %vm3482_vm13, %v2808_v61, 0.0  ;;  %v1260_v61 = vld [vmem:[#allocation4 + $0x30] sm:$0xff]  ;;  %v1157_v32 = vld [vmem:[#allocation5 + $0x78] sm:$0xff] }
 0x282   : > { %v1264_v34 = vld [vmem:[#allocation4 + $0x50] sm:$0xff] }
 0x283   : > { %v1893_v31 = vpop.eup %1892  ;;  %v878_v6 = vmul.f32 1.442695, %v855_v63 }
 0x284   : > { %v796_v39 = vpop.permute.xlu1 %795  ;;  %956 = vadd.xlane.f32.xlu0 %v1893_v31  ;;  %v1255_v31 = vld [vmem:[#allocation4 + $0x8] sm:$0xff] }
 0x285   : > { %1898 = vpow2.f32 %v878_v6  ;;  %v853_v53 = vsub.f32 %v2831_v8, %v796_v39 }
 0x286   : > { %1900 = vpow2.f32 %v894_v14 }
 0x287   : > { %v1895_v20 = vpop.eup %1894  ;;  %v874_v27 = vmul.f32 1.442695, %v853_v53 }
 0x288   : > { %936 = vadd.xlane.f32.xlu0 %v1895_v20 }
 0x289   : > { %1902 = vpow2.f32 %v874_v27  ;;  %v1257_v27 = vld [vmem:[#allocation4 + $0x18] sm:$0xff] }
 0x28b   : > { %v1897_v44 = vpop.eup %1896 }
 0x28c   : > { %952 = vadd.xlane.f32.xlu0 %v1897_v44 }
 0x28f   : > { %v1899_v5 = vpop.eup %1898 }
 0x290   : > { %942 = vadd.xlane.f32.xlu1 %v1899_v5  ;;  %1314 = vadd.xlane.f32.xlu0 %v1284_v7  ;;  %v1901_v12 = vpop.eup %1900  ;;  %v1259_v7 = vld [vmem:[#allocation4 + $0x28] sm:$0xff] }
 0x293   : > { %v1903_v57 = vpop.eup %1902 }
 0x294   : > { %958 = vadd.xlane.f32.xlu1 %v1901_v12 }
 0x298   : > { %938 = vadd.xlane.f32.xlu1 %v1903_v57 }
 0x29d   : > { %v1287_v8 = vpop.xlane.xlu0 %1286 }
 0x29e   : > { %v1318_v58 = vadd.f32 %v1287_v8, %v1254_v41  ;;  %v1261_v41 = vld [vmem:[#allocation4 + $0x38] sm:$0xff] }
 0x2a0   : > { %1334 = vst.msk [vmem:[#allocation4] sm:$0xff] %vm976_vm9, %v1318_v58 }
 0x2a1   : > { %v1291_v22 = vpop.xlane.xlu0 %1290 }
 0x2a2   : > { %v1320_v54 = vadd.f32 %v1291_v22, %v1256_v49  ;;  %v1263_v49 = vld [vmem:[#allocation4 + $0x48] sm:$0xff] }
 0x2a4   : > { %1336 = vst.msk [vmem:[#allocation4 + $0x10] sm:$0xff] %vm976_vm9, %v1320_v54 }
 0x2a5   : > { %v1295_v19 = vpop.xlane.xlu0 %1294 }
 0x2a6   : > { %v1322_v24 = vadd.f32 %v1295_v19, %v1258_v3  ;;  %v1285_v3 = vsel %vm2664_vm12, %v2823_v4, 0.0  ;;  %v1265_v19 = vld [vmem:[#allocation4 + $0x58] sm:$0xff] }
 0x2a8   : > { %1338 = vst.msk [vmem:[#allocation4 + $0x20] sm:$0xff] %vm976_vm9, %v1322_v24 }
 0x2a9   : > { %v1299_v10 = vpop.xlane.xlu0 %1298 }
 0x2aa   : > { %v1324_v37 = vadd.f32 %v1299_v10, %v1260_v61  ;;  %v1267_v10 = vld [vmem:[#allocation4 + $0x68] sm:$0xff] }
 0x2ac   : > { %1340 = vst.msk [vmem:[#allocation4 + $0x30] sm:$0xff] %vm976_vm9, %v1324_v37 }
 0x2ad   : > { %v1303_v16 = vpop.xlane.xlu0 %1302 }
 0x2ae   : > { %v1326_v13 = vadd.f32 %v1303_v16, %v1262_v56  ;;  %v1266_v16 = vld [vmem:[#allocation4 + $0x60] sm:$0xff] }
 0x2b0   : > { %1342 = vst.msk [vmem:[#allocation4 + $0x40] sm:$0xff] %vm976_vm9, %v1326_v13 }
 0x2b1   : > { %v1307_v45 = vpop.xlane.xlu0 %1306 }
 0x2b2   : > { %v1328_v38 = vadd.f32 %v1307_v45, %v1264_v34  ;;  %v3483_v34 = vsub.f32 %v2862_v50, %v2868_v47  ;;  %v3484_v45 = vsub.f32 %v2870_v43, %v2884_v60  ;;  %v3487_v50 = vsub.f32 %v2872_v51, %v2887_v0  ;;  %v906_v51 = vld [vmem:[#allocation3 + $0x50] sm:$0xff] }
 0x2b3   : > { %v3488_v43 = vsub.f32 %v2911_v26, %v2927_v15  ;;  %v3490_v0 = vsub.f32 %v2909_v25, %v2924_v1  ;;  %v3491_v26 = vsub.f32 %v2929_v48, %v2944_v17  ;;  %v3492_v25 = vld [vmem:[#allocation7_spill] sm:$0xff] }
 0x2b4   : > { %1344 = vst.msk [vmem:[#allocation4 + $0x50] sm:$0xff] %vm976_vm9, %v1328_v38  ;;  %v740_v28 = vmul.f32 1.442695, %v3483_v34  ;;  %v736_v38 = vmul.f32 1.442695, %v3484_v45  ;;  %v3493_v1 = vsub.f32 %v3492_v25, %v2963_v11  ;;  %v897_v11 = vld [vmem:[#allocation3 + $0x8] sm:$0xff] }
 0x2b5   : > { %v742_v47 = vmul.f32 1.442695, %v3487_v50  ;;  %v738_v60 = vmul.f32 1.442695, %v3488_v43  ;;  %v748_v15 = vmul.f32 1.442695, %v3491_v26 }
 0x2b6   : > { %v1221_v59 = vpop.xlane.xlu1 %1220 }
 0x2b7   : > { %v1237_v63 = vadd.f32 %v1221_v59, %v1157_v32  ;;  %v3485_v32 = vsub.f32 %v2860_v29, %v2865_v33  ;;  %v3489_v29 = vsub.f32 %v2891_v35, %v2907_v23 }
 0x2b9   : > { %1253 = vst.msk [vmem:[#allocation5 + $0x78] sm:$0xff] %vm976_vm9, %v1237_v63  ;;  %v836_v6 = vpop.permute.xlu0 %835  ;;  %v756_v59 = vmul.f32 1.442695, %v3485_v32  ;;  %v3486_v63 = vsub.f32 %v2889_v2, %v2904_v21  ;;  %v758_v33 = vmul.f32 1.442695, %v3489_v29  ;;  %v896_v21 = vld [vmem:[#allocation3] sm:$0xff] }
 0x2ba   : > { %v861_v39 = vsub.f32 %v2833_v9, %v836_v6  ;;  %v1289_v14 = vpop.xlane.xlu1 %1288  ;;  %v902_v32 = vld [vmem:[#allocation3 + $0x30] sm:$0xff] }
 0x2bb   : > { %v1319_v53 = vadd.f32 %v1289_v14, %v1255_v31  ;;  %v752_v31 = vmul.f32 1.442695, %v3486_v63  ;;  %v3496_v63 = vld [vmem:[#allocation6_spill] sm:$0xff]  ;;  %v3498_v29 = vld [vmem:[#allocation8_spill] sm:$0xff] }
 0x2bc   : > { %v890_v20 = vmul.f32 1.442695, %v861_v39  ;;  %v898_v39 = vld [vmem:[#allocation3 + $0x10] sm:$0xff] }
 0x2bd   : > { %1335 = vst.msk [vmem:[#allocation4 + $0x8] sm:$0xff] %vm976_vm9, %v1319_v53 }
 0x2be   : > { %1904 = vpow2.f32 %v890_v20  ;;  %v1293_v44 = vpop.xlane.xlu1 %1292 }
 0x2bf   : > { %v1321_v5 = vadd.f32 %v1293_v44, %v1257_v27  ;;  %1906 = vpow2.f32 %v740_v28  ;;  %v754_v44 = vmul.f32 1.442695, %v3490_v0  ;;  %v3501_v0 = vsub.f32 %v2970_v30, %v2986_v36 }
 0x2c0   : > { %1908 = vpow2.f32 %v736_v38 }
 0x2c1   : > { %1337 = vst.msk [vmem:[#allocation4 + $0x18] sm:$0xff] %vm976_vm9, %v1321_v5  ;;  %1910 = vpow2.f32 %v756_v59  ;;  %v905_v59 = vld [vmem:[#allocation3 + $0x48] sm:$0xff] }
 0x2c2   : > { %v1297_v12 = vpop.xlane.xlu1 %1296  ;;  %1912 = vpow2.f32 %v752_v31  ;;  %v3497_v31 = vsub.f32 %v3496_v63, %v2947_v46 }
 0x2c3   : > { %v1323_v57 = vadd.f32 %v1297_v12, %v1259_v7  ;;  %1914 = vpow2.f32 %v742_v47 }
 0x2c4   : > { %1916 = vpow2.f32 %v738_v60  ;;  %v750_v50 = vmul.f32 1.442695, %v3497_v31  ;;  %v910_v60 = vld [vmem:[#allocation3 + $0x70] sm:$0xff] }
 0x2c5   : > { %1339 = vst.msk [vmem:[#allocation4 + $0x28] sm:$0xff] %vm976_vm9, %v1323_v57  ;;  %1918 = vpow2.f32 %v758_v33  ;;  %v3499_v33 = vld [vmem:[#allocation9_spill] sm:$0xff] }
 0x2c6   : > { %v1301_v8 = vpop.xlane.xlu1 %1300  ;;  %1920 = vpow2.f32 %v754_v44  ;;  %v746_v44 = vmul.f32 1.442695, %v3501_v0  ;;  %v1355_v0 = vld [vmem:[#allocation2 + $0x8] sm:$0xff] (!%p1744_p9) }
 0x2c7   : > { %v1325_v58 = vadd.f32 %v1301_v8, %v1261_v41  ;;  %v904_v41 = vld [vmem:[#allocation3 + $0x40] sm:$0xff]  ;;  %1922 = vpow2.f32 %v748_v15 }
 0x2c8   : > { %v1905_v9 = vpop.eup %1904 }
 0x2c9   : > { %1341 = vst.msk [vmem:[#allocation4 + $0x38] sm:$0xff] %vm976_vm9, %v1325_v58  ;;  %954 = vadd.xlane.f32.xlu1 %v1905_v9  ;;  %v1907_v6 = vpop.eup %1906  ;;  %v764_v58 = vmul.f32 1.442695, %v3493_v1  ;;  %v1268_v1 = vld [vmem:[#allocation4 + $0x70] sm:$0xff] }
 0x2ca   : > { %v1305_v22 = vpop.xlane.xlu1 %1304  ;;  %v914_v14 = vmul.f32 %v1907_v6, %v898_v39  ;;  %v1909_v53 = vpop.eup %1908 }
 0x2cb   : > { %v1327_v54 = vadd.f32 %v1305_v22, %v1263_v49  ;;  %v1911_v20 = vpop.eup %1910  ;;  %v912_v35 = vmul.f32 %v1909_v53, %v896_v21  ;;  %v899_v49 = vld [vmem:[#allocation3 + $0x18] sm:$0xff]  ;;  %1924 = vpow2.f32 %v764_v58 }
 0x2cc   : > { %v922_v23 = vmul.f32 %v1911_v20, %v906_v51  ;;  %v1913_v7 = vpop.eup %1912  ;;  %v900_v51 = vld [vmem:[#allocation3 + $0x20] sm:$0xff] }
 0x2cd   : > { %1343 = vst.msk [vmem:[#allocation4 + $0x48] sm:$0xff] %vm976_vm9, %v1327_v54  ;;  %1316 = vadd.xlane.f32.xlu1 %v1285_v3  ;;  %v920_v48 = vmul.f32 %v1913_v7, %v904_v41  ;;  %v1915_v17 = vpop.eup %1914  ;;  %v3494_v54 = vsub.f32 %v2968_v55, %v2983_v52  ;;  %v903_v41 = vld [vmem:[#allocation3 + $0x38] sm:$0xff] }
 0x2ce   : > { %v1309_v24 = vpop.xlane.xlu1 %1308 }
 0x2cf   : > { %v1329_v61 = vadd.f32 %v1309_v24, %v1265_v19  ;;  %v744_v3 = vmul.f32 1.442695, %v3494_v54  ;;  %v1917_v19 = vpop.eup %1916  ;;  %v915_v24 = vmul.f32 %v1915_v17, %v899_v49 }
 0x2d0   : > { %v913_v34 = vmul.f32 %v1917_v19, %v897_v11  ;;  %v901_v19 = vld [vmem:[#allocation3 + $0x28] sm:$0xff] }
 0x2d1   : > { %1345 = vst.msk [vmem:[#allocation4 + $0x58] sm:$0xff] %vm976_vm9, %v1329_v61  ;;  %v1919_v61 = vpop.eup %1918  ;;  %1926 = vpow2.f32 %v744_v3 }
 0x2d2   : > { %v1313_v37 = vpop.xlane.xlu1 %1312  ;;  %v1921_v28 = vpop.eup %1920 }
 0x2d3   : > { %v1331_v56 = vadd.f32 %v1313_v37, %v1267_v10  ;;  %v907_v37 = vld [vmem:[#allocation3 + $0x58] sm:$0xff] }
 0x2d4   : > { %v923_v55 = vmul.f32 %v1919_v61, %v907_v37  ;;  %v733_v37 = vsub.f32 %v2990_v40, %v3005_v62 }
 0x2d5   : > { %1347 = vst.msk [vmem:[#allocation4 + $0x68] sm:$0xff] %vm976_vm9, %v1331_v56 }
 0x2e6   : > { %v1311_v13 = vpop.xlane.xlu0 %1310 }
 0x2e7   : > { %v1330_v4 = vadd.f32 %v1311_v13, %v1266_v16  ;;  %v3495_v16 = vsub.f32 %v2988_v18, %v3002_v42  ;;  %v921_v42 = vmul.f32 %v1921_v28, %v905_v59  ;;  %v3169_v59 = vld [vmem:[#allocation5 + $0x8] sm:$0xff] (!%p1744_p9) }
 0x2e8   : > { %v1531_v63 = vadd.f32 (!%p1744_p9), 1e-05, %v3169_v59  ;;  %vm1451_vm3 = vcmp.gt.f32.partialorder (!%p1744_p9), %v3169_v59, 0.0 }
 0x2e9   : > { %1346 = vst.msk [vmem:[#allocation4 + $0x60] sm:$0xff] %vm976_vm9, %v1330_v4  ;;  %v760_v13 = vmul.f32 1.442695, %v3495_v16  ;;  %v1923_v4 = vpop.eup %1922 }
 0x2ea   : > { %v918_v18 = vmul.f32 %v1923_v4, %v902_v32  ;;  %v1925_v6 = vpop.eup %1924  ;;  %v3166_v32 = vld [vmem:[#allocation5] sm:$0xff] (!%p1744_p9) }
 0x2eb   : > { %1928 = vpow2.f32 %v760_v13  ;;  %v926_v21 = vmul.f32 %v1925_v6, %v910_v60  ;;  %v1927_v20 = vpop.eup %1926  ;;  %v909_v13 = vld [vmem:[#allocation3 + $0x68] sm:$0xff]  ;;  %v1530_v40 = vadd.f32 (!%p1744_p9), 1e-05, %v3166_v32  ;;  %vm1450_vm12 = vcmp.gt.f32.partialorder (!%p1744_p9), %v3166_v32, 0.0 }
 0x2ec   : > { %1930 = vpow2.f32 %v750_v50  ;;  %v916_v15 = vmul.f32 %v1927_v20, %v900_v51  ;;  %v3172_v50 = vld [vmem:[#allocation5 + $0x10] sm:$0xff] (!%p1744_p9)  ;;  %v3180_v60 = vld [vmem:[#allocation5 + $0x28] sm:$0xff] (!%p1744_p9)  ;;  %v3186_v20 = vld [vmem:[#allocation5 + $0x38] sm:$0xff] (!%p1744_p9) }
 0x2ed   : > { %vm1452_vm7 = vcmp.gt.f32.partialorder (!%p1744_p9), %v3172_v50, 0.0  ;;  %vm1455_vm10 = vcmp.gt.f32.partialorder (!%p1744_p9), %v3180_v60, 0.0  ;;  %vm1457_vm4 = vcmp.gt.f32.partialorder (!%p1744_p9), %v3186_v20, 0.0 }
 0x2f9   : > { %v933_v2 = vpop.xlane.xlu0 %932 }
 0x2fa   : > { %v962_v27 = vadd.f32 %v933_v2, %v914_v14  ;;  %v3500_v14 = vsub.f32 %v3498_v29, %v3499_v33 }
 0x2fc   : > { %979 = vst.msk [vmem:[#allocation3 + $0x10] sm:$0xff] %vm976_vm9, %v962_v27  ;;  %v766_v53 = vmul.f32 1.442695, %v3500_v14  ;;  %v3183_v14 = vld [vmem:[#allocation5 + $0x30] sm:$0xff] (!%p1744_p9) }
 0x2fd   : > { %v929_v5 = vpop.xlane.xlu1 %928  ;;  %vm1456_vm6 = vcmp.gt.f32.partialorder (!%p1744_p9), %v3183_v14, 0.0 }
 0x2fe   : > { %v949_v12 = vpop.xlane.xlu0 %948  ;;  %v960_v57 = vadd.f32 %v929_v5, %v912_v35  ;;  %1932 = vpow2.f32 %v766_v53  ;;  %v1929_v35 = vpop.eup %1928  ;;  %v908_v5 = vld [vmem:[#allocation3 + $0x60] sm:$0xff]  ;;  %v1535_v53 = vadd.f32 (!%p1744_p9), 1e-05, %v3180_v60 }
 0x2ff   : > { %v970_v8 = vadd.f32 %v949_v12, %v922_v23  ;;  %1934 = vpow2.f32 %v746_v44  ;;  %v1931_v12 = vpop.eup %1930  ;;  %v1536_v44 = vadd.f32 (!%p1744_p9), 1e-05, %v3183_v14 }
 0x300   : > { %977 = vst.msk [vmem:[#allocation3] sm:$0xff] %vm976_vm9, %v960_v57  ;;  %v924_v57 = vmul.f32 %v1929_v35, %v908_v5  ;;  %v919_v58 = vmul.f32 %v1931_v12, %v903_v41  ;;  %v3189_v35 = vld [vmem:[#allocation5 + $0x40] sm:$0xff] (!%p1744_p9)  ;;  %v1537_v12 = vadd.f32 (!%p1744_p9), 1e-05, %v3186_v20 }
 0x301   : > { %987 = vst.msk [vmem:[#allocation3 + $0x50] sm:$0xff] %vm976_vm9, %v970_v8  ;;  %vm1458_vm15 = vcmp.gt.f32.partialorder (!%p1744_p9), %v3189_v35, 0.0 }
 0x302   : > { %v945_v9 = vpop.xlane.xlu0 %944 }
 0x303   : > { %v968_v22 = vadd.f32 %v945_v9, %v920_v48  ;;  %v911_v48 = vld [vmem:[#allocation3 + $0x78] sm:$0xff]  ;;  %v1372_v31 = vld [vmem:[#allocation3 + $0x10] sm:$0xff] (!%p1744_p9) }
 0x305   : > { %985 = vst.msk [vmem:[#allocation3 + $0x40] sm:$0xff] %vm976_vm9, %v968_v22  ;;  %v935_v10 = vpop.xlane.xlu1 %934 }
 0x306   : > { %v963_v56 = vadd.f32 %v935_v10, %v915_v24 }
 0x308   : > { %980 = vst.msk [vmem:[#allocation3 + $0x18] sm:$0xff] %vm976_vm9, %v963_v56  ;;  %v1933_v30 = vpop.eup %1932  ;;  %v762_v56 = vmul.f32 1.442695, %v733_v37 }
 0x309   : > { %v931_v52 = vpop.xlane.xlu0 %930  ;;  %v927_v22 = vmul.f32 %v1933_v30, %v911_v48  ;;  %v1935_v54 = vpop.eup %1934  ;;  %v1538_v48 = vadd.f32 (!%p1744_p9), 1e-05, %v3189_v35 }
 0x30a   : > { %v961_v45 = vadd.f32 %v931_v52, %v913_v34  ;;  %v951_v38 = vpop.xlane.xlu1 %950  ;;  %v917_v11 = vmul.f32 %v1935_v54, %v901_v19  ;;  %1936 = vpow2.f32 %v762_v56 }
 0x30b   : > { %v971_v47 = vadd.f32 %v951_v38, %v923_v55  ;;  %v1269_v55 = vld [vmem:[#allocation4 + $0x78] sm:$0xff]  ;;  %v1370_v38 = vld [vmem:[#allocation3] sm:$0xff] (!%p1744_p9) }
 0x30c   : > { %978 = vst.msk [vmem:[#allocation3 + $0x8] sm:$0xff] %vm976_vm9, %v961_v45  ;;  %1938 = vlog2.f32 (!%p1744_p9), %v1370_v38 }
 0x30d   : > { %988 = vst.msk [vmem:[#allocation3 + $0x58] sm:$0xff] %vm976_vm9, %v971_v47  ;;  %v941_v39 = vpop.xlane.xlu0 %940  ;;  %v1532_v47 = vadd.f32 (!%p1744_p9), 1e-05, %v3172_v50 }
 0x30e   : > { %v947_v43 = vpop.xlane.xlu1 %946  ;;  %v966_v2 = vadd.f32 %v941_v39, %v918_v18 }
 0x30f   : > { %v969_v46 = vadd.f32 %v947_v43, %v921_v42  ;;  %v1373_v18 = vld [vmem:[#allocation3 + $0x18] sm:$0xff] (!%p1744_p9)  ;;  %v3178_v43 = vld [vmem:[#allocation5 + $0x20] sm:$0xff] (!%p1744_p9) }
 0x310   : > { %983 = vst.msk [vmem:[#allocation3 + $0x30] sm:$0xff] %vm976_vm9, %v966_v2  ;;  %v3175_v42 = vld [vmem:[#allocation5 + $0x18] sm:$0xff] (!%p1744_p9)  ;;  %v1534_v29 = vadd.f32 (!%p1744_p9), 1e-05, %v3178_v43  ;;  %vm1454_vm2 = vcmp.gt.f32.partialorder (!%p1744_p9), %v3178_v43, 0.0 }
 0x311   : > { %986 = vst.msk [vmem:[#allocation3 + $0x48] sm:$0xff] %vm976_vm9, %v969_v46  ;;  %v957_v27 = vpop.xlane.xlu0 %956  ;;  %v1533_v6 = vadd.f32 (!%p1744_p9), 1e-05, %v3175_v42  ;;  %vm1453_vm11 = vcmp.gt.f32.partialorder (!%p1744_p9), %v3175_v42, 0.0 }
 0x312   : > { %v974_v26 = vadd.f32 %v957_v27, %v926_v21  ;;  %v1354_v21 = vld [vmem:[#allocation2] sm:$0xff] (!%p1744_p9) }
 0x313   : > { %v1371_v62 = vld [vmem:[#allocation3 + $0x8] sm:$0xff] (!%p1744_p9) }
 0x314   : > { %991 = vst.msk [vmem:[#allocation3 + $0x70] sm:$0xff] %vm976_vm9, %v974_v26  ;;  %v1937_v16 = vpop.eup %1936  ;;  %1940 = vlog2.f32 (!%p1744_p9), %v1371_v62 }
 0x315   : > { %v937_v23 = vpop.xlane.xlu0 %936  ;;  %v925_v34 = vmul.f32 %v1937_v16, %v909_v13  ;;  %1942 = vlog2.f32 (!%p1744_p9), %v1372_v31  ;;  %v1358_v13 = vld [vmem:[#allocation2 + $0x20] sm:$0xff] (!%p1744_p9)  ;;  %v1469_v31 = vld [vmem:[#allocation4 + $0x18] sm:$0xff] (!%p1744_p9) }
 0x316   : > { %v964_v7 = vadd.f32 %v937_v23, %v916_v15  ;;  %1944 = vrcp.f32 (!%p1744_p9), %v1530_v40  ;;  %v1939_v46 = vpop.eup (!%p1744_p9), %1938 }
 0x317   : > { %1946 = vrcp.f32 (!%p1744_p9), %v1531_v63  ;;  %v1376_v2 = vld [vmem:[#allocation3 + $0x30] sm:$0xff] (!%p1744_p9)  ;;  %v1387_v51 = vmul.f32 (!%p1744_p9), 0.6931472, %v1939_v46 }
 0x318   : > { %981 = vst.msk [vmem:[#allocation3 + $0x20] sm:$0xff] %vm976_vm9, %v964_v7  ;;  %1948 = vlog2.f32 (!%p1744_p9), %v1373_v18  ;;  %v1356_v7 = vld [vmem:[#allocation2 + $0x10] sm:$0xff] (!%p1744_p9) }
 0x319   : > { %v953_v8 = vpop.xlane.xlu0 %952  ;;  %1950 = vrcp.f32 (!%p1744_p9), %v1532_v47  ;;  %v1418_v5 = vadd.f32 (!%p1744_p9), %v1387_v51, %v1354_v21  ;;  %v1359_v47 = vld [vmem:[#allocation2 + $0x28] sm:$0xff] (!%p1744_p9) }
 0x31a   : > { %v972_v25 = vadd.f32 %v953_v8, %v924_v57  ;;  %v1378_v57 = vld [vmem:[#allocation3 + $0x40] sm:$0xff] (!%p1744_p9) }
 0x31b   : > { %v1466_v8 = vld [vmem:[#allocation4] sm:$0xff] (!%p1744_p9)  ;;  %v1482_v30 = vmul.f32 (!%p1744_p9), %v3166_v32, %v1418_v5 }
 0x31c   : > { %989 = vst.msk [vmem:[#allocation3 + $0x60] sm:$0xff] %vm976_vm9, %v972_v25 }
 0x31d   : > { %v943_v36 = vpop.xlane.xlu1 %942  ;;  %v1315_v17 = vpop.xlane.xlu0 %1314 }
 0x31e   : > { %v967_v9 = vadd.f32 %v943_v36, %v919_v58  ;;  %v1332_v49 = vadd.f32 %v1315_v17, %v1268_v1  ;;  %v1941_v27 = vpop.eup (!%p1744_p9), %1940  ;;  %v1467_v36 = vld [vmem:[#allocation4 + $0x8] sm:$0xff] (!%p1744_p9) }
 0x31f   : > { %v1374_v39 = vld [vmem:[#allocation3 + $0x20] sm:$0xff] (!%p1744_p9)  ;;  %v1389_v15 = vmul.f32 (!%p1744_p9), 0.6931472, %v1941_v27  ;;  %v1943_v23 = vpop.eup (!%p1744_p9), %1942  ;;  %v1379_v17 = vld [vmem:[#allocation3 + $0x48] sm:$0xff] (!%p1744_p9) }
 0x320   : > { %984 = vst.msk [vmem:[#allocation3 + $0x38] sm:$0xff] %vm976_vm9, %v967_v9  ;;  %1348 = vst.msk [vmem:[#allocation4 + $0x70] sm:$0xff] %vm976_vm9, %v1332_v49  ;;  %1952 = vlog2.f32 (!%p1744_p9), %v1374_v39  ;;  %v1945_v41 = vpop.eup (!%p1744_p9), %1944  ;;  %v1391_v1 = vmul.f32 (!%p1744_p9), 0.6931472, %v1943_v23  ;;  %v3196_v9 = vld [vmem:[#allocation5 + $0x48] sm:$0xff] (!%p1744_p9) }
 0x321   : > { %v959_v3 = vpop.xlane.xlu1 %958  ;;  %1954 = vrcp.f32 (!%p1744_p9), %v1533_v6  ;;  %v1419_v25 = vadd.f32 (!%p1744_p9), %v1389_v15, %v1355_v0  ;;  %v1947_v58 = vpop.eup (!%p1744_p9), %1946  ;;  %v3219_v15 = vld [vmem:[#allocation5 + $0x58] sm:$0xff] (!%p1744_p9)  ;;  %v1471_v23 = vld [vmem:[#allocation4 + $0x28] sm:$0xff] (!%p1744_p9)  ;;  %vm1459_vm5 = vcmp.gt.f32.partialorder (!%p1744_p9), %v3196_v9, 0.0 }
 0x322   : > { %v975_v24 = vadd.f32 %v959_v3, %v927_v22  ;;  %v1949_v49 = vpop.eup (!%p1744_p9), %1948  ;;  %v1420_v54 = vadd.f32 (!%p1744_p9), %v1391_v1, %v1356_v7  ;;  %v1357_v3 = vld [vmem:[#allocation2 + $0x18] sm:$0xff] (!%p1744_p9)  ;;  %vm1461_vm8 = vcmp.gt.f32.partialorder (!%p1744_p9), %v3219_v15, 0.0 }
 0x323   : > { %v1483_v22 = vmul.f32 (!%p1744_p9), %v3169_v59, %v1419_v25  ;;  %v1951_v19 = vpop.eup (!%p1744_p9), %1950  ;;  %v1470_v59 = vld [vmem:[#allocation4 + $0x20] sm:$0xff] (!%p1744_p9)  ;;  %v1361_v7 = vld [vmem:[#allocation2 + $0x38] sm:$0xff] (!%p1744_p9) }
 0x324   : > { %992 = vst.msk [vmem:[#allocation3 + $0x78] sm:$0xff] %vm976_vm9, %v975_v24  ;;  %v1498_v24 = vsub.f32 (!%p1744_p9), %v1466_v8, %v1482_v30  ;;  %v1484_v16 = vmul.f32 (!%p1744_p9), %v3172_v50, %v1420_v54  ;;  %v1382_v1 = vld [vmem:[#allocation3 + $0x60] sm:$0xff] (!%p1744_p9) }
 0x325   : > { %v939_v61 = vpop.xlane.xlu1 %938  ;;  %v1499_v56 = vsub.f32 (!%p1744_p9), %v1467_v36, %v1483_v22 }
 0x326   : > { %v965_v10 = vadd.f32 %v939_v61, %v917_v11  ;;  %v1468_v11 = vld [vmem:[#allocation4 + $0x10] sm:$0xff] (!%p1744_p9)  ;;  %v1393_v61 = vmul.f32 (!%p1744_p9), 0.6931472, %v1949_v49 }
 0x327   : > { %v1377_v26 = vld [vmem:[#allocation3 + $0x38] sm:$0xff] (!%p1744_p9)  ;;  %v1515_v62 = vsel (!%p1744_p9), %vm1451_vm3, %v1499_v56, 0.0  ;;  %v1500_v63 = vsub.f32 (!%p1744_p9), %v1468_v11, %v1484_v16  ;;  %v1363_v56 = vld [vmem:[#allocation2 + $0x48] sm:$0xff] (!%p1744_p9) }
 0x328   : > { %982 = vst.msk [vmem:[#allocation3 + $0x28] sm:$0xff] %vm976_vm9, %v965_v10  ;;  %v1380_v10 = vld [vmem:[#allocation3 + $0x50] sm:$0xff] (!%p1744_p9)  ;;  %v1549_v6 = vmul.f32 (!%p1744_p9), %v1947_v58, %v1515_v62 }
 0x32a   : > { %v1953_v37 = vpop.eup (!%p1744_p9), %1952  ;;  %1579 = vst.msk [vmem:[%s2130_s13 + $0x8] sm:$0xff] (!%p1744_p9), %vm976_vm9, %v1549_v6  ;;  %v3244_v6 = vld [vmem:[#allocation5 + $0x68] sm:$0xff] (!%p1744_p9) }
 0x32b   : > { %vm1463_vm0 = vcmp.gt.f32.partialorder (!%p1744_p9), %v3244_v6, 0.0 }
 0x32f   : > { %v1375_v33 = vld [vmem:[#allocation3 + $0x28] sm:$0xff] (!%p1744_p9) }
 0x330   : > { %1956 = vlog2.f32 (!%p1744_p9), %v1375_v33  ;;  %v1381_v33 = vld [vmem:[#allocation3 + $0x58] sm:$0xff] (!%p1744_p9) }
 0x331   : > { %1958 = vrcp.f32 (!%p1744_p9), %v1534_v29 }
 0x332   : > { %1960 = vlog2.f32 (!%p1744_p9), %v1376_v2  ;;  %v1516_v2 = vsel (!%p1744_p9), %vm1452_vm7, %v1500_v63, 0.0 }
 0x333   : > { %1962 = vrcp.f32 (!%p1744_p9), %v1535_v53  ;;  %v1551_v27 = vmul.f32 (!%p1744_p9), %v1951_v19, %v1516_v2 }
 0x334   : > { %1964 = vlog2.f32 (!%p1744_p9), %v1377_v26  ;;  %v1360_v26 = vld [vmem:[#allocation2 + $0x30] sm:$0xff] (!%p1744_p9) }
 0x335   : > { %1966 = vrcp.f32 (!%p1744_p9), %v1536_v44  ;;  %1580 = vst.msk [vmem:[%s2130_s13 + $0x10] sm:$0xff] (!%p1744_p9), %vm976_vm9, %v1551_v27 }
 0x336   : > { %1968 = vlog2.f32 (!%p1744_p9), %v1378_v57 }
 0x337   : > { %1970 = vrcp.f32 (!%p1744_p9), %v1537_v12 }
 0x338   : > { %1972 = vlog2.f32 (!%p1744_p9), %v1379_v17  ;;  %v1541_v17 = vadd.f32 (!%p1744_p9), 1e-05, %v3219_v15 }
 0x339   : > { %1974 = vrcp.f32 (!%p1744_p9), %v1538_v48  ;;  %v1362_v48 = vld [vmem:[#allocation2 + $0x40] sm:$0xff] (!%p1744_p9) }
 0x33a   : > { %1976 = vlog2.f32 (!%p1744_p9), %v1380_v10 }
 0x356   : > { %v955_v28 = vpop.xlane.xlu1 %954 }
 0x357   : > { %v973_v52 = vadd.f32 %v955_v28, %v925_v34  ;;  %1353 = sbr.rel (%p1744_p9) target bundleno = 896 (0x380), region = 44  ;;  %v1539_v34 = vadd.f32 (!%p1744_p9), 1e-05, %v3196_v9  ;;  %v1955_v28 = vpop.eup (!%p1744_p9), %1954 }
 0x358   : > { %v1957_v38 = vpop.eup (!%p1744_p9), %1956 }
 0x359   : > { %990 = vst.msk [vmem:[#allocation3 + $0x68] sm:$0xff] %vm976_vm9, %v973_v52  ;;  %v1514_v52 = vsel (!%p1744_p9), %vm1450_vm12, %v1498_v24, 0.0  ;;  %v1959_v18 = vpop.eup (!%p1744_p9), %1958  ;;  %v1397_v29 = vmul.f32 (!%p1744_p9), 0.6931472, %v1957_v38  ;;  %1978 = vrcp.f32 (!%p1744_p9), %v1539_v34  ;;  %v3231_v24 = vld [vmem:[#allocation5 + $0x60] sm:$0xff] (!%p1744_p9) }
 0x35a   : > { %v1317_v4 = vpop.xlane.xlu1 %1316  ;;  %v1547_v40 = vmul.f32 (!%p1744_p9), %v1945_v41, %v1514_v52  ;;  %v1961_v53 = vpop.eup (!%p1744_p9), %1960  ;;  %1980 = vlog2.f32 (!%p1744_p9), %v1381_v33  ;;  %v1542_v62 = vadd.f32 (!%p1744_p9), 1e-05, %v3231_v24  ;;  %v1384_v33 = vld [vmem:[#allocation3 + $0x70] sm:$0xff] (!%p1744_p9)  ;;  %vm1462_vm14 = vcmp.gt.f32.partialorder (!%p1744_p9), %v3231_v24, 0.0 }
 0x35b   : > { %v1333_v45 = vadd.f32 %v1317_v4, %v1269_v55  ;;  %v1421_v55 = vadd.f32 (!%p1744_p9), %v1393_v61, %v1357_v3  ;;  %v1395_v4 = vmul.f32 (!%p1744_p9), 0.6931472, %v1953_v37  ;;  %v1963_v21 = vpop.eup (!%p1744_p9), %1962  ;;  %v1423_v44 = vadd.f32 (!%p1744_p9), %v1397_v29, %v1359_v47  ;;  %v1473_v37 = vld [vmem:[#allocation4 + $0x38] sm:$0xff] (!%p1744_p9)  ;;  %v1364_v47 = vld [vmem:[#allocation2 + $0x50] sm:$0xff] (!%p1744_p9)  ;;  %v1475_v29 = vld [vmem:[#allocation4 + $0x48] sm:$0xff] (!%p1744_p9) }
 0x35c   : > { %1578 = vst.msk [vmem:[%s2130_s13] sm:$0xff] (!%p1744_p9), %vm976_vm9, %v1547_v40  ;;  %v1965_v50 = vpop.eup (!%p1744_p9), %1964  ;;  %v1399_v5 = vmul.f32 (!%p1744_p9), 0.6931472, %v1961_v53  ;;  %v1474_v40 = vld [vmem:[#allocation4 + $0x40] sm:$0xff] (!%p1744_p9) }
 0x35d   : > { %1349 = vst.msk [vmem:[#allocation4 + $0x78] sm:$0xff] %vm976_vm9, %v1333_v45  ;;  %v3205_v45 = vld [vmem:[#allocation5 + $0x50] sm:$0xff] (!%p1744_p9)  ;;  %v1485_v32 = vmul.f32 (!%p1744_p9), %v3175_v42, %v1421_v55  ;;  %v1422_v39 = vadd.f32 (!%p1744_p9), %v1395_v4, %v1358_v13  ;;  %v1967_v12 = vpop.eup (!%p1744_p9), %1966  ;;  %v1487_v8 = vmul.f32 (!%p1744_p9), %v3180_v60, %v1423_v44  ;;  %v1401_v25 = vmul.f32 (!%p1744_p9), 0.6931472, %v1965_v50  ;;  %v1385_v44 = vld [vmem:[#allocation3 + $0x78] sm:$0xff] (!%p1744_p9) }
 0x35e   : > { %v1540_v46 = vadd.f32 1e-05, %v3205_v45  ;;  %v1969_v58 = vpop.eup %1968  ;;  %v1424_v36 = vadd.f32 %v1399_v5, %v1360_v26  ;;  %v1472_v42 = vld [vmem:[#allocation4 + $0x30] sm:$0xff]  ;;  %vm1460_vm1 = vcmp.gt.f32.partialorder %v3205_v45, 0.0 }
 0x35f   : > { %v1501_v51 = vsub.f32 %v1469_v31, %v1485_v32  ;;  %v1486_v0 = vmul.f32 %v3178_v43, %v1422_v39  ;;  %v1971_v49 = vpop.eup %1970  ;;  %v1503_v54 = vsub.f32 %v1471_v23, %v1487_v8  ;;  %v1425_v3 = vadd.f32 %v1401_v25, %v1361_v7  ;;  %v1476_v50 = vld [vmem:[#allocation4 + $0x50] sm:$0xff]  ;;  %v3268_v8 = vld [vmem:[#allocation5 + $0x78] sm:$0xff] }
 0x360   : > { %1982 = vrcp.f32 %v1540_v46  ;;  %v1403_v19 = vmul.f32 0.6931472, %v1969_v58  ;;  %v1973_v11 = vpop.eup %1972  ;;  %v1488_v10 = vmul.f32 %v3183_v14, %v1424_v36  ;;  %v1383_v52 = vld [vmem:[#allocation3 + $0x68] sm:$0xff]  ;;  %v3260_v5 = vld [vmem:[#allocation5 + $0x70] sm:$0xff]  ;;  %v1366_v36 = vld [vmem:[#allocation2 + $0x60] sm:$0xff]  ;;  %vm1465_vm12 = vcmp.gt.f32.partialorder %v3268_v8, 0.0 }
 0x361   : > { %v1517_v57 = vsel %vm1453_vm11, %v1501_v51, 0.0  ;;  %v1502_v41 = vsub.f32 %v1470_v59, %v1486_v0  ;;  %1984 = vlog2.f32 %v1382_v1  ;;  %v1975_v43 = vpop.eup %1974  ;;  %v1519_v16 = vsel %vm1455_vm10, %v1503_v54, 0.0  ;;  %v1365_v51 = vld [vmem:[#allocation2 + $0x58] sm:$0xff] }
 0x362   : > { %v1553_v30 = vmul.f32 %v1955_v28, %v1517_v57  ;;  %v1489_v13 = vmul.f32 %v3186_v20, %v1425_v3  ;;  %v1426_v34 = vadd.f32 %v1403_v19, %v1362_v48  ;;  %v1405_v28 = vmul.f32 0.6931472, %v1973_v11  ;;  %v1977_v55 = vpop.eup %1976 }
 0x363   : > { %v1518_v22 = vsel %vm1454_vm2, %v1502_v41, 0.0  ;;  %v1557_v4 = vmul.f32 %v1963_v21, %v1519_v16  ;;  %v1504_v38 = vsub.f32 %v1472_v42, %v1488_v10  ;;  %1986 = vrcp.f32 %v1541_v17  ;;  %v1979_v32 = vpop.eup %1978  ;;  %v1367_v10 = vld [vmem:[#allocation2 + $0x68] sm:$0xff] }
 0x364   : > { %1581 = vst.msk [vmem:[%s2130_s13 + $0x18] sm:$0xff] %vm976_vm9, %v1553_v30  ;;  %v1555_v61 = vmul.f32 %v1959_v18, %v1518_v22  ;;  %v1505_v63 = vsub.f32 %v1473_v37, %v1489_v13  ;;  %v1490_v31 = vmul.f32 %v3189_v35, %v1426_v34  ;;  %v1427_v60 = vadd.f32 %v1405_v28, %v1363_v56  ;;  %v1981_v21 = vpop.eup %1980  ;;  %v1477_v30 = vld [vmem:[#allocation4 + $0x58] sm:$0xff]  ;;  %v1368_v28 = vld [vmem:[#allocation2 + $0x70] sm:$0xff] }
 0x365   : > { %v1407_v18 = vmul.f32 0.6931472, %v1977_v55  ;;  %1583 = vst.msk [vmem:[%s2130_s13 + $0x28] sm:$0xff] %vm976_vm9, %v1557_v4  ;;  %v1520_v39 = vsel %vm1456_vm6, %v1504_v38, 0.0  ;;  %1988 = vlog2.f32 %v1383_v52  ;;  %v1543_v0 = vadd.f32 1e-05, %v3244_v6 }
 0x366   : > { %1582 = vst.msk [vmem:[%s2130_s13 + $0x20] sm:$0xff] %vm976_vm9, %v1555_v61  ;;  %v1559_v53 = vmul.f32 %v1967_v12, %v1520_v39  ;;  %v1521_v2 = vsel %vm1457_vm4, %v1505_v63, 0.0  ;;  %v1506_v59 = vsub.f32 %v1474_v40, %v1490_v31  ;;  %v1491_v46 = vmul.f32 %v3196_v9, %v1427_v60  ;;  %v1478_v61 = vld [vmem:[#allocation4 + $0x60] sm:$0xff]  ;;  %v1479_v52 = vld [vmem:[#allocation4 + $0x68] sm:$0xff] }
 0x367   : > { %v1561_v27 = vmul.f32 %v1971_v49, %v1521_v2  ;;  %v1428_v14 = vadd.f32 %v1407_v18, %v1364_v47  ;;  %1990 = vrcp.f32 %v1542_v62  ;;  %v1409_v23 = vmul.f32 0.6931472, %v1981_v21  ;;  %v1369_v62 = vld [vmem:[#allocation2 + $0x78] sm:$0xff]  ;;  %v1480_v18 = vld [vmem:[#allocation4 + $0x70] sm:$0xff] }
 0x368   : > { %1584 = vst.msk [vmem:[%s2130_s13 + $0x30] sm:$0xff] %vm976_vm9, %v1559_v53  ;;  %v1522_v26 = vsel %vm1458_vm15, %v1506_v59, 0.0  ;;  %v1507_v20 = vsub.f32 %v1475_v29, %v1491_v46  ;;  %1992 = vlog2.f32 %v1384_v33  ;;  %v1544_v48 = vadd.f32 1e-05, %v3260_v5  ;;  %v1481_v33 = vld [vmem:[#allocation4 + $0x78] sm:$0xff] }
 0x369   : > { %1585 = vst.msk [vmem:[%s2130_s13 + $0x38] sm:$0xff] %vm976_vm9, %v1561_v27  ;;  %v1563_v12 = vmul.f32 %v1975_v43, %v1522_v26  ;;  %v1492_v57 = vmul.f32 %v3205_v45, %v1428_v14  ;;  %v1429_v35 = vadd.f32 %v1409_v23, %v1365_v51  ;;  %1994 = vlog2.f32 %v1385_v44 }
 0x36a   : > { %v1983_v7 = vpop.eup %1982  ;;  %v1523_v41 = vsel %vm1459_vm5, %v1507_v20, 0.0  ;;  %1996 = vrcp.f32 %v1543_v0  ;;  %v1545_v54 = vadd.f32 1e-05, %v3268_v8  ;;  %vm1464_vm13 = vcmp.gt.f32.partialorder %v3260_v5, 0.0 }
 0x36b   : > { %v1985_v25 = vpop.eup %1984  ;;  %1586 = vst.msk [vmem:[%s2130_s13 + $0x40] sm:$0xff] %vm976_vm9, %v1563_v12  ;;  %v1565_v1 = vmul.f32 %v1979_v32, %v1523_v41  ;;  %v1508_v58 = vsub.f32 %v1476_v50, %v1492_v57  ;;  %v1493_v9 = vmul.f32 %v3219_v15, %v1429_v35  ;;  %1998 = vrcp.f32 %v1544_v48 }
 0x36c   : > { %v1411_v17 = vmul.f32 0.6931472, %v1985_v25  ;;  %2000 = vrcp.f32 %v1545_v54 }
 0x36d   : > { %v1987_v49 = vpop.eup %1986  ;;  %1587 = vst.msk [vmem:[%s2130_s13 + $0x48] sm:$0xff] %vm976_vm9, %v1565_v1  ;;  %v1524_v22 = vsel %vm1460_vm1, %v1508_v58, 0.0  ;;  %v1509_v3 = vsub.f32 %v1477_v30, %v1493_v9 }
 0x36e   : > { %v1567_v42 = vmul.f32 %v1983_v7, %v1524_v22  ;;  %v1430_v19 = vadd.f32 %v1411_v17, %v1366_v36 }
 0x36f   : > { %v1989_v11 = vpop.eup %1988  ;;  %v1525_v37 = vsel %vm1461_vm8, %v1509_v3, 0.0 }
 0x370   : > { %1588 = vst.msk [vmem:[%s2130_s13 + $0x50] sm:$0xff] %vm976_vm9, %v1567_v42  ;;  %v1494_v56 = vmul.f32 %v3231_v24, %v1430_v19  ;;  %v1413_v43 = vmul.f32 0.6931472, %v1989_v11  ;;  %v1569_v16 = vmul.f32 %v1987_v49, %v1525_v37 }
 0x371   : > { %v1991_v45 = vpop.eup %1990 }
 0x372   : > { %v1993_v15 = vpop.eup %1992  ;;  %v1510_v13 = vsub.f32 %v1478_v61, %v1494_v56  ;;  %v1431_v34 = vadd.f32 %v1413_v43, %v1367_v10  ;;  %1589 = vst.msk [vmem:[%s2130_s13 + $0x58] sm:$0xff] %vm976_vm9, %v1569_v16 }
 0x373   : > { %v1415_v55 = vmul.f32 0.6931472, %v1993_v15  ;;  %v1995_v4 = vpop.eup %1994 }
 0x374   : > { %v1526_v38 = vsel %vm1462_vm14, %v1510_v13, 0.0  ;;  %v1495_v40 = vmul.f32 %v3244_v6, %v1431_v34  ;;  %v1417_v24 = vmul.f32 0.6931472, %v1995_v4  ;;  %v1997_v60 = vpop.eup %1996 }
 0x375   : > { %v1571_v63 = vmul.f32 %v1991_v45, %v1526_v38  ;;  %v1432_v31 = vadd.f32 %v1415_v55, %v1368_v28  ;;  %v1999_v53 = vpop.eup %1998 }
 0x376   : > { %v1511_v47 = vsub.f32 %v1479_v52, %v1495_v40  ;;  %v1433_v39 = vadd.f32 %v1417_v24, %v1369_v62  ;;  %v2001_v46 = vpop.eup %2000 }
 0x377   : > { %1590 = vst.msk [vmem:[%s2130_s13 + $0x60] sm:$0xff] %vm976_vm9, %v1571_v63  ;;  %v1496_v32 = vmul.f32 %v3260_v5, %v1432_v31 }
 0x378   : > { %v1527_v29 = vsel %vm1463_vm0, %v1511_v47, 0.0  ;;  %v1497_v59 = vmul.f32 %v3268_v8, %v1433_v39 }
 0x379   : > { %v1573_v2 = vmul.f32 %v1997_v60, %v1527_v29  ;;  %v1512_v6 = vsub.f32 %v1480_v18, %v1496_v32 }
 0x37a   : > { %v1513_v27 = vsub.f32 %v1481_v33, %v1497_v59 }
 0x37b   : > { %1591 = vst.msk [vmem:[%s2130_s13 + $0x68] sm:$0xff] %vm976_vm9, %v1573_v2  ;;  %v1528_v21 = vsel %vm1464_vm13, %v1512_v6, 0.0 }
 0x37c   : > { %v1575_v14 = vmul.f32 %v1999_v53, %v1528_v21  ;;  %v1529_v51 = vsel %vm1465_vm12, %v1513_v27, 0.0 }
 0x37d   : > { %v1577_v0 = vmul.f32 %v2001_v46, %v1529_v51 }
 0x37e   : > { %1592 = vst.msk [vmem:[%s2130_s13 + $0x70] sm:$0xff] %vm976_vm9, %v1575_v14 }
 0x37f   : > { %1593 = vst.msk [vmem:[%s2130_s13 + $0x78] sm:$0xff] %vm976_vm9, %v1577_v0 }
 0x380 PF: > { %s14_s19 = sadd.s32 1, %s2040_s19   ;;  %s3502_s15 = smov %s2032_s17 }
 0x381   : > { %p11_p10 = scmp.ge.s32.totalorder %s14_s19, 11   ;;  %s3503_s16 = smov %s2036_s18 }
 0x382   : > { %s3504_s17 = smov %s3507_s20  ;;  %s3505_s18 = smov %s3511_s21 }
 0x383   :  { %13 = sbr.rel (!%p11_p10) target bundleno = 3 (0x3), region = 83 }

</bundles_post_ra>
